<compile_context>
chip_gen: v5e
topology: v5e:2x2
jax: 0.10.0
libtpu: 0.0.40
codegen_flags: <defaults>
</compile_context>

<pallas_src>
import functools

import jax
import jax.numpy as jnp
from jax.experimental import pallas as pl
from jax.experimental.pallas import tpu as pltpu


def _head_kernel(x_ref, wqkv_ref, bqkv_ref, o_ref, q_scr, m_scr, *,
                 head_size, t_tile, mxu_dtype):
    """One (batch, T-tile) grid step.

    x_ref:    (t_tile, E)     mxu_dtype (bf16 by default)
    wqkv_ref: (E, 3*hs)       mxu_dtype; cols [0,hs)=Wq*scale, [hs,2hs)=Wk, [2hs,3hs)=Wv
    bqkv_ref: (1, 3*hs)       mxu_dtype; fused bias (bq already scaled)
    o_ref:    (T, hs)         output block, resident across the t axis
    q_scr:    (T, hs)         mxu_dtype VMEM scratch holding scaled Q tiles
    m_scr:    (hs, hs)        f32 VMEM accumulator for K^T V
    """
    hs = head_size
    t = pl.program_id(1)
    nt = pl.num_programs(1)

    @pl.when(t == 0)
    def _():
        m_scr[...] = jnp.zeros_like(m_scr)

    # --- phase 1: fused QKV projection of this x tile (single lane-dense
    # N = 3*hs matmul on the MXU, f32 accumulation) ---------------------------
    qkv = jnp.dot(x_ref[...], wqkv_ref[...],
                  preferred_element_type=jnp.float32) + bqkv_ref[...]   # (tt, 3hs) f32

    q = qkv[:, :hs]              # already scaled by hs**-0.5 (folded into Wq/bq)
    k = qkv[:, hs:2 * hs]
    v = qkv[:, 2 * hs:]

    # Stash this Q tile in VMEM for phase 2 (never goes to HBM).
    off = pl.multiple_of(t * t_tile, t_tile)
    q_scr[pl.ds(off, t_tile), :] = q.astype(q_scr.dtype)

    # Accumulate M += K_t^T V_t (dim-0 contraction, (hs,hs) result, f32 acc).
    m_scr[...] += jax.lax.dot_general(
        k.astype(mxu_dtype), v.astype(mxu_dtype),
        dimension_numbers=(((0,), (0,)), ((), ())),
        preferred_element_type=jnp.float32)

    # --- phase 2: on the last T tile, out = Q_scratch @ M --------------------
    @pl.when(t == nt - 1)
    def _():
        out = jnp.dot(q_scr[...], m_scr[...].astype(mxu_dtype),
                      preferred_element_type=jnp.float32)               # (T, hs) f32
        o_ref[...] = out.astype(o_ref.dtype)


def head_forward(x, wq, bq, wk, bk, wv, bv, *, t_tile=256, mxu_dtype=jnp.bfloat16):
    """Pallas forward for `Head`.

    mxu_dtype=jnp.bfloat16 (default) feeds bf16 operands to the MXU with f32
    accumulation; pass jnp.float32 for bit-tighter (but much slower) matmuls.
    """
    B, T, E = x.shape
    hs = wq.shape[1]
    scale = float(hs) ** -0.5

    t_tile = min(t_tile, T)
    assert T % t_tile == 0 and t_tile % 8 == 0, "T must tile by a multiple of 8"
    assert hs % 128 == 0, "head_size must be a multiple of 128 (lane alignment)"
    assert E % 128 == 0, "embedding size must be a multiple of 128"
    nt = T // t_tile

    # Fold the 1/sqrt(hs) scale into the query projection and fuse Q/K/V
    # host-side into one lane-dense (E, 3*hs) weight + (1, 3*hs) bias, cast to
    # the MXU operand dtype so the kernel DMAs half the bytes.
    wqkv = jnp.concatenate([wq * scale, wk, wv], axis=1).astype(mxu_dtype)
    bqkv = jnp.concatenate([bq * scale, bk, bv], axis=0).reshape(1, 3 * hs).astype(mxu_dtype)
    x_in = x.astype(mxu_dtype)

    kernel = functools.partial(_head_kernel, head_size=hs, t_tile=t_tile,
                               mxu_dtype=mxu_dtype)

    return pl.pallas_call(
        kernel,
        out_shape=jax.ShapeDtypeStruct((B, T, hs), x.dtype),
        grid_spec=pltpu.PrefetchScalarGridSpec(
            num_scalar_prefetch=0,
            grid=(B, nt),
            in_specs=[
                pl.BlockSpec((None, t_tile, E), lambda b, t: (b, t, 0)),   # x tile
                pl.BlockSpec((E, 3 * hs), lambda b, t: (0, 0)),            # W_qkv (revisited)
                pl.BlockSpec((1, 3 * hs), lambda b, t: (0, 0)),            # b_qkv (revisited)
            ],
            out_specs=pl.BlockSpec((None, T, hs), lambda b, t: (b, 0, 0)), # resident over t
            scratch_shapes=[
                pltpu.VMEM((T, hs), mxu_dtype),     # Q stash for phase 2
                pltpu.VMEM((hs, hs), jnp.float32),  # M = K^T V accumulator
            ],
        ),
        compiler_params=pltpu.CompilerParams(
            dimension_semantics=("parallel", "arbitrary")),
    )(x_in, wqkv, bqkv)


def _reference(x, wq, bq, wk, bk, wv, bv):
    """Pure-JAX reference with identical (quirky) semantics, f32-exact matmuls."""
    hs = wq.shape[1]
    hp = jax.lax.Precision.HIGHEST
    Q = jnp.einsum("bte,ef->btf", x, wq, precision=hp) + bq
    K = jnp.einsum("bte,ef->btf", x, wk, precision=hp) + bk
    V = jnp.einsum("bte,ef->btf", x, wv, precision=hp) + bv
    wei = jnp.einsum("btf,bsf->bts", Q, K, precision=hp) * float(hs) ** -0.5
    # all-ones tril -> mask is a no-op; softmax result is discarded by the module.
    return jnp.einsum("bts,bsf->btf", wei, V, precision=hp)


def _init_params(key, E, hs):
    ks = jax.random.split(key, 6)
    s_in = 1.0 / jnp.sqrt(E)
    return dict(
        wq=jax.random.normal(ks[0], (E, hs), jnp.float32) * s_in,
        wk=jax.random.normal(ks[1], (E, hs), jnp.float32) * s_in,
        wv=jax.random.normal(ks[2], (E, hs), jnp.float32) * s_in,
        bq=jax.random.normal(ks[3], (hs,), jnp.float32) * 0.02,
        bk=jax.random.normal(ks[4], (hs,), jnp.float32) * 0.02,
        bv=jax.random.normal(ks[5], (hs,), jnp.float32) * 0.02,
    )


if __name__ == "__main__":
    # Small, tile-friendly shapes consistent with the module's (B, block, emb)
    # input; head_size=128 keeps slicing/output lane-dense.  t_tile=128 gives
    # a (B, nt) = (2, 2) grid so the T-streaming path is exercised.
    B, T, E, HS = 2, 256, 256, 128
    key = jax.random.PRNGKey(0)
    kx, kp = jax.random.split(key)
    x = jax.random.normal(kx, (B, T, E), jnp.float32)
    params = _init_params(kp, E, HS)

    out = head_forward(x, t_tile=128, **params)   # bf16 MXU operands (default)
    out = jax.block_until_ready(out)
    ref = jax.block_until_ready(_reference(x, **params))

    assert out.shape == (B, T, HS)
    # bf16 operands + associativity rewrite change rounding vs the f32
    # reference; check normalized max error instead of raw allclose.
    err = float(jnp.max(jnp.abs(out - ref)))
    scale = float(jnp.max(jnp.abs(ref))) + 1e-6
    assert err / scale < 2e-2, f"mismatch vs JAX reference: rel_err={err / scale:.4e}"

    print("KERNEL_OK")
</pallas_src>

<mosaic_0001>
module attributes {stable_mosaic.version = 11 : i64} {
  func.func @_head_kernel(%arg0: i32, %arg1: i32, %arg2: memref<1x128x256xbf16, #tpu.memory_space<vmem>>, %arg3: memref<256x384xbf16, #tpu.memory_space<vmem>>, %arg4: memref<1x384xbf16, #tpu.memory_space<vmem>>, %arg5: memref<1x256x128xf32, #tpu.memory_space<vmem>>, %arg6: memref<256x128xbf16, #tpu.memory_space<vmem>>, %arg7: memref<128x128xf32, #tpu.memory_space<vmem>>) attributes {dimension_semantics = [#tpu.dimension_semantics<parallel>, #tpu.dimension_semantics<arbitrary>], iteration_bounds = array<i64: 2, 2>, scalar_prefetch = 0 : i64, scratch_operands = 2 : i64, tpu.core_type = #tpu.core_type<tc>, window_params = [{transform_indices = @transform_0, window_bounds = array<i64: 1, 128, 256>}, {pipeline_mode = #tpu.pipeline_mode<synchronous>, transform_indices = @transform_1, window_bounds = array<i64: 256, 384>}, {pipeline_mode = #tpu.pipeline_mode<synchronous>, transform_indices = @transform_2, window_bounds = array<i64: 1, 384>}, {transform_indices = @transform_3, window_bounds = array<i64: 1, 256, 128>}]} {
    %c0_i32 = arith.constant 0 : i32
    %0 = arith.cmpi eq, %arg1, %c0_i32 : i32
    %1 = arith.extui %0 : i1 to i32
    %c0_i32_0 = arith.constant 0 : i32
    %2 = arith.cmpi ne, %1, %c0_i32_0 : i32
    scf.if %2 {
      %cst_14 = arith.constant 0.000000e+00 : f32
      %28 = vector.broadcast %cst_14 : f32 to vector<128x128xf32>
      %c0_15 = arith.constant 0 : index
      %c0_16 = arith.constant 0 : index
      %29 = vector.load %arg7[%c0_15, %c0_16] : memref<128x128xf32, #tpu.memory_space<vmem>>, vector<128x128xf32>
      tpu.vector_store %arg7[%c0_15, %c0_16], %28 {strides = array<i32>} : memref<128x128xf32, #tpu.memory_space<vmem>>, vector<128x128xf32>,
    } else {
    }
    %c0 = arith.constant 0 : index
    %c0_1 = arith.constant 0 : index
    %c0_2 = arith.constant 0 : index
    %3 = vector.load %arg2[%c0, %c0_1, %c0_2] : memref<1x128x256xbf16, #tpu.memory_space<vmem>>, vector<1x128x256xbf16>
    %4 = vector.shape_cast %3 : vector<1x128x256xbf16> to vector<128x256xbf16>
    %c0_3 = arith.constant 0 : index
    %c0_4 = arith.constant 0 : index
    %5 = vector.load %arg3[%c0_3, %c0_4] : memref<256x384xbf16, #tpu.memory_space<vmem>>, vector<256x384xbf16>
    %cst = arith.constant dense<0.000000e+00> : vector<128x384xf32>
    %6 = tpu.matmul %4, %5, %cst {dimension_numbers = #tpu.dot_dimension_numbers<[1], [0], [0], [1], [0, 0, 1, 1], [], []>} : vector<128x256xbf16>, vector<256x384xbf16>, vector<128x384xf32> -> vector<128x384xf32>
    %c0_5 = arith.constant 0 : index
    %c0_6 = arith.constant 0 : index
    %7 = vector.load %arg4[%c0_5, %c0_6] : memref<1x384xbf16, #tpu.memory_space<vmem>>, vector<1x384xbf16>
    %8 = arith.extf %7 : vector<1x384xbf16> to vector<1x384xf32>
    %9 = vector.broadcast %8 : vector<1x384xf32> to vector<128x384xf32>
    %10 = arith.addf %6, %9 : vector<128x384xf32>
    %11 = vector.extract_strided_slice %10 {offsets = [0, 0], sizes = [128, 128], strides = [1, 1]} : vector<128x384xf32> to vector<128x128xf32>
    %12 = vector.extract_strided_slice %10 {offsets = [0, 128], sizes = [128, 128], strides = [1, 1]} : vector<128x384xf32> to vector<128x128xf32>
    %13 = vector.extract_strided_slice %10 {offsets = [0, 256], sizes = [128, 128], strides = [1, 1]} : vector<128x384xf32> to vector<128x128xf32>
    %c128_i32 = arith.constant 128 : i32
    %14 = arith.muli %arg1, %c128_i32 : i32
    %15 = tpu.assume_multiple %14, 128 : i32
    %16 = arith.truncf %11 : vector<128x128xf32> to vector<128x128xbf16>
    %17 = arith.index_cast %15 : i32 to index
    %c0_7 = arith.constant 0 : index
    %18 = vector.load %arg6[%17, %c0_7] : memref<256x128xbf16, #tpu.memory_space<vmem>>, vector<128x128xbf16>
    tpu.vector_store %arg6[%17, %c0_7], %16 {strides = array<i32>} : memref<256x128xbf16, #tpu.memory_space<vmem>>, vector<128x128xbf16>,
    %c0_8 = arith.constant 0 : index
    %c0_9 = arith.constant 0 : index
    %19 = vector.load %arg7[%c0_8, %c0_9] : memref<128x128xf32, #tpu.memory_space<vmem>>, vector<128x128xf32>
    %20 = arith.truncf %12 : vector<128x128xf32> to vector<128x128xbf16>
    %21 = arith.truncf %13 : vector<128x128xf32> to vector<128x128xbf16>
    %cst_10 = arith.constant dense<0.000000e+00> : vector<128x128xf32>
    %22 = tpu.matmul %20, %21, %cst_10 {dimension_numbers = #tpu.dot_dimension_numbers<[0], [0], [1], [1], [0, 1, 1, 1], [], []>} : vector<128x128xbf16>, vector<128x128xbf16>, vector<128x128xf32> -> vector<128x128xf32>
    %23 = arith.addf %19, %22 : vector<128x128xf32>
    %c0_11 = arith.constant 0 : index
    %c0_12 = arith.constant 0 : index
    %24 = vector.load %arg7[%c0_11, %c0_12] : memref<128x128xf32, #tpu.memory_space<vmem>>, vector<128x128xf32>
    tpu.vector_store %arg7[%c0_11, %c0_12], %23 {strides = array<i32>} : memref<128x128xf32, #tpu.memory_space<vmem>>, vector<128x128xf32>,
    %c1_i32 = arith.constant 1 : i32
    %25 = arith.cmpi eq, %arg1, %c1_i32 : i32
    %26 = arith.extui %25 : i1 to i32
    %c0_i32_13 = arith.constant 0 : i32
    %27 = arith.cmpi ne, %26, %c0_i32_13 : i32
    scf.if %27 {
      %c0_14 = arith.constant 0 : index
      %c0_15 = arith.constant 0 : index
      %28 = vector.load %arg6[%c0_14, %c0_15] : memref<256x128xbf16, #tpu.memory_space<vmem>>, vector<256x128xbf16>
      %c0_16 = arith.constant 0 : index
      %c0_17 = arith.constant 0 : index
      %29 = vector.load %arg7[%c0_16, %c0_17] : memref<128x128xf32, #tpu.memory_space<vmem>>, vector<128x128xf32>
      %30 = arith.truncf %29 : vector<128x128xf32> to vector<128x128xbf16>
      %cst_18 = arith.constant dense<0.000000e+00> : vector<256x128xf32>
      %31 = tpu.matmul %28, %30, %cst_18 {dimension_numbers = #tpu.dot_dimension_numbers<[1], [0], [0], [1], [0, 0, 1, 1], [], []>} : vector<256x128xbf16>, vector<128x128xbf16>, vector<256x128xf32> -> vector<256x128xf32>
      %c0_19 = arith.constant 0 : index
      %c0_20 = arith.constant 0 : index
      %c0_21 = arith.constant 0 : index
      %32 = vector.load %arg5[%c0_19, %c0_20, %c0_21] : memref<1x256x128xf32, #tpu.memory_space<vmem>>, vector<1x256x128xf32>
      %33 = vector.shape_cast %32 : vector<1x256x128xf32> to vector<256x128xf32>
      %34 = vector.shape_cast %31 : vector<256x128xf32> to vector<1x256x128xf32>
      tpu.vector_store %arg5[%c0_19, %c0_20, %c0_21], %34 {strides = array<i32>} : memref<1x256x128xf32, #tpu.memory_space<vmem>>, vector<1x256x128xf32>,
    } else {
    }
    return
  }
  func.func @transform_0(%arg0: i32, %arg1: i32) -> (i32, i32, i32) {
    %c0_i32 = arith.constant 0 : i32
    %c0_i32_0 = arith.constant 0 : i32
    return %arg0, %arg1, %c0_i32 : i32, i32, i32
  }
  func.func @transform_1(%arg0: i32, %arg1: i32) -> (i32, i32) {
    %c0_i32 = arith.constant 0 : i32
    %c0_i32_0 = arith.constant 0 : i32
    %c0_i32_1 = arith.constant 0 : i32
    return %c0_i32, %c0_i32_0 : i32, i32
  }
  func.func @transform_2(%arg0: i32, %arg1: i32) -> (i32, i32) {
    %c0_i32 = arith.constant 0 : i32
    %c0_i32_0 = arith.constant 0 : i32
    %c0_i32_1 = arith.constant 0 : i32
    return %c0_i32, %c0_i32_0 : i32, i32
  }
  func.func @transform_3(%arg0: i32, %arg1: i32) -> (i32, i32, i32) {
    %c0_i32 = arith.constant 0 : i32
    %c0_i32_0 = arith.constant 0 : i32
    %c0_i32_1 = arith.constant 0 : i32
    return %arg0, %c0_i32, %c0_i32_0 : i32, i32, i32
  }
}

</mosaic_0001>

<bundles_post_ra>
// kernel: tpu_custom_call.1
= control target key start
LH: loop header
LB: loop body
LE: loop exit
PB: predicated region body
PF: predicated region fallthrough
CT: control target
= control target key end

     0   :  { %s3037_s0 = inlined_call_operand.hbm [shape: bf16[2,256,256], index: 0, kind: input, shape index: {}]   ;;  %s3038_s1 = inlined_call_operand.hbm [shape: bf16[256,384], index: 1, kind: input, shape index: {}]   ;;  %s3039_s2 = inlined_call_operand.hbm [shape: bf16[1,384], index: 2, kind: input, shape index: {}]   ;;  %s3040_s3 = inlined_call_operand.hbm [shape: f32[2,256,128], index: 3, kind: output, shape index: {}]  }
   0x1   :  { %3048 = sst [smem:[#allocation20_spill]] %s3038_s1 }
   0x2   :  { %3049 = sst [smem:[#allocation21_spill]] %s3039_s2 }
   0x3   :  { %3050 = sst [smem:[#allocation22_spill]] %s3040_s3 }
   0x4   :  { %8 = vsyncpa [#allocation5], 0 }
   0x5   :  { %10 = vsyncpa [#allocation5 + $0x1], 0 }
   0x6   :  { %11 = vsyncpa [#allocation8], 0 }
   0x7   :  { %12 = vsyncpa [#allocation6], 0 }
   0x8   :  { %14 = vsyncpa [#allocation6 + $0x1], 0  ;;  %s2477_s12 = smov 0   ;;  %s2479_s13 = smov 0  }
   0x9   :  { %s2481_s14 = smov 0   ;;  %s2483_s15 = smov 0  }
   0xa   :  { %s2485_s16 = smov 0   ;;  %s2487_s17 = smov 0  }
   0xb   :  { %s2489_s18 = smov 0   ;;  %s2491_s19 = smov 0  }
   0xc   :  { %s2493_s20 = smov 0   ;;  %s2495_s21 = smov 0  }
   0xd   :  { %s2497_s22 = smov 0  }
   0xe LB: > { %3051 = sst [smem:[#allocation14_spill]] %s2405_s12  ;;  %s1549_s23 = sadd.s32 4294967295, %s2445_s22   ;;  %s2445_s22 = sphi %s2497_s22, %s20_s22   ;;  %s2441_s21 = sphi %s2495_s21, %s3086_s21   ;;  %s2437_s20 = sphi %s2493_s20, %s3085_s20   ;;  %s2433_s19 = sphi %s2491_s19, %s3084_s19   ;;  %s2429_s18 = sphi %s2489_s18, %s3083_s18   ;;  %s2425_s17 = sphi %s2487_s17, %s3082_s17   ;;  %s2421_s16 = sphi %s2485_s16, %s3081_s16   ;;  %s2417_s15 = sphi %s2483_s15, %s3080_s15   ;;  %s2413_s14 = sphi %s2481_s14, %s3079_s14   ;;  %s2409_s13 = sphi %s2479_s13, %s3078_s13   ;;  %s2405_s12 = sphi %s2477_s12, %s3077_s12  }
   0xf   : > { %3052 = sst [smem:[#allocation15_spill]] %s2429_s18  ;;  %s1550_s24 = sadd.s32 4294967294, %s2445_s22  }
  0x10   : > { %3053 = sst [smem:[#allocation16_spill]] %s2433_s19  ;;  %p54_p0 = scmp.ne.s32.totalorder %s2421_s16, %s2417_s15 }
  0x11   : > { %p2533_p1 = scmp.eq.s32.totalorder %s1549_s23, 0  ;;  %p119_p2 = scmp.ne.s32.totalorder %s2413_s14, %s2409_s13 }
  0x12   : > { %p120_p3 = scmp.eq.s32.totalorder %s1549_s23, 3  ;;  %p125_p5 = scmp.ne.s32.totalorder %s2409_s13, %s2405_s12 }
  0x13   : > { %p2541_p4 = por %p2533_p1, %p54_p0  ;;  %p126_p7 = scmp.eq.s32.totalorder %s1550_s24, 3 }
  0x14   : > { %p2547_p6 = por %p120_p3, %p119_p2  ;;  %p1551_p8 = scmp.ge.s32.totalorder %s2445_s22, 1 }
  0x15   : > { %p133_p9 = scmp.lt.s32.totalorder %s2445_s22, 5  ;;  %p2553_p10 = por %p126_p7, %p125_p5 }
  0x16   : > { %s3056_s27 = scalar_select %p2547_p6, 1, 0 }
  0x17   : > { %s3058_s28 = scalar_select %p2553_p10, 1, 0 }
  0x18   : > { %3057 = sst [smem:[#allocation17_spill]] %s3056_s27  ;;  %p2557_p11 = pnand %p1551_p8, %p133_p9 }
  0x19   : > { %3059 = sst [smem:[#allocation18_spill]] %s3058_s28  ;;  %s2447_s6 = smov [#allocation7]  }
  0x1a   : > { %s3061_s1 = sld [smem:[#allocation20_spill]]  ;;  %p2111_p12 = pneg %p2557_p11 }
  0x1b   : > { %s146_s7 = sshll.u32 %s2447_s6, 4  ;;  %s3062_s2 = sld [smem:[#allocation21_spill]]  ;;  %s147_s7 = int_to_ptr.vmem [resolvable:$true] %s146_s7 }
  0x1c   : > { %p2112_p13 = pnand %p2111_p12, %p2533_p1  ;;  %s2448_s11 = smov 192  }
  0x1d   : > { %s2449_s15 = smov 12   ;;  %s2450_s23 = smov [#allocation9]  }
  0x1e   : > { %s161_s24 = sshll.u32 %s2450_s23, 4  ;;  %s29_s30 = sadd.s32 1, %s2437_s20  ;;  %s162_s24 = int_to_ptr.vmem [resolvable:$true] %s161_s24 }
  0x1f   : > { %p30_p0 = scmp.ge.s32.totalorder %s29_s30, 2  ;;  %s32_s4 = sadd.s32 1, %s2441_s21 }
  0x20   : > { %s144_s5 = sshll.u32 %s3061_s1, 4  ;;  %s41_s6 = sadd.s32 1, %s2425_s17  ;;  %s145_s5 = int_to_ptr.hbm [resolvable:$true] %s144_s5 }
  0x21   : > { %s159_s10 = sshll.u32 %s3062_s2, 4  ;;  %p48_p2 = scmp.ne.s32.totalorder %s2425_s17, %s2421_s16  ;;  %s160_s10 = int_to_ptr.hbm [resolvable:$true] %s159_s10 }
  0x22   : > { %2114 = dma.hbm_to_vmem [thread:$0]  (!%p2112_p13), %s145_s5, 6144, %s147_s7, [#allocation8], %s2448_s11, %s2448_s11, %s2449_s15  }
  0x23   : > { %2117 = dma.hbm_to_vmem [thread:$0]  (!%p2112_p13), %s160_s10, 48, %s162_s24, [#allocation8]  }
  0x24   : > { %s3088_s30 = smov (%p30_p0, %s29_s30), 0  ;;  %s3090_s4 = smov (!%p30_p0, %s32_s4), %s2441_s21 }
  0x25   : > { %3063 = sst [smem:[#allocation19_spill]] %s3088_s30  ;;  %s37_s5 = ssub.s32 %s2437_s20, %s3088_s30 }
  0x26   : > { %p49_p3 = scmp.eq.s32.totalorder %s2445_s22, 0  ;;  %p34_p5 = scmp.ge.s32.totalorder %s3090_s4, 2 }
  0x27   : > { %s109_s7 = sadd.s32 1, %s2413_s14  ;;  %p2128_p8 = scmp.lt.s32.totalorder %s2445_s22, 4 }
  0x28   : > { %p2583_p7 = por %p49_p3, %p48_p2  ;;  %s3092_s4 = smov (%p34_p5, %s3090_s4), 0 }
  0x29   : > { %s172_s9 = sand.u32 1, %s2425_s17   ;;  %s1894_s10 = sshll.u32 %s2437_s20, 5 }
  0x2a   : > { %s36_s11 = ssub.s32 %s2441_s21, %s3092_s4  ;;  %s1555_s23 = sshll.u32 %s172_s9, 7 }
  0x2b   : > { %s38_s15 = sor.u32 %s37_s5, %s36_s11  ;;  %p107_p9 = scmp.eq.s32.totalorder %s36_s11, 0 }
  0x2c   : > { %p39_p12 = scmp.eq.s32.totalorder %s38_s15, 0  ;;  %s1558_s2 = sshll.u32 %s2441_s21, 6 }
  0x2d   : > { %s2595_s24 = scalar_select %p107_p9, %s2413_s14, %s109_s7  }
  0x2e   : > { %s2598_s1 = scalar_select %p39_p12, %s2425_s17, %s41_s6  }
  0x2f   : > { %s182_s30 = sadd.s32 %s1894_s10, %s1558_s2  ;;  %s176_s28 = scalar_lea.vmem [#allocation4], %s1555_s23 }
  0x30   : > { %s187_s12 = sshll.u32 %s176_s28, 4  ;;  %s1559_s3 = sshll.u32 %s182_s30, 2  ;;  %s188_s12 = int_to_ptr.vmem [resolvable:$true] %s187_s12 }
  0x31   : > { %s184_s18 = scalar_lea.hbm %s3037_s0, %s1559_s3  ;;  %p2119_p13 = pnand %p2128_p8, %p2583_p7 }
  0x32   : > { %s185_s5 = sshll.u32 %s184_s18, 4  ;;  %s173_s11 = scalar_lea.sflag [#allocation5], %s172_s9  ;;  %s186_s5 = int_to_ptr.hbm [resolvable:$true] %s185_s5 }
  0x33   : > { %s2451_s7 = smov 128   ;;  %s2452_s15 = smov 8  }
  0x34   : > { %2121 = dma.hbm_to_vmem [thread:$0]  (!%p2119_p13), %s186_s5, 2048, %s188_s12, %s173_s11, %s2451_s7, %s2451_s7, %s2452_s15  }
  0x35   : > { %199 = sbr.rel (%p2557_p11) target bundleno = 1076 (0x434), region = 32  ;;  %s201_s2 = sand.u32 (!%p2557_p11), 1, %s2421_s16  }
  0x36   : > { %s1561_s28 = sshll.u32 (!%p2557_p11), %s201_s2, 7  ;;  %s202_s30 = scalar_lea.sflag (!%p2557_p11), [#allocation5], %s201_s2 }
  0x37   : > { %s2611_s6 = scalar_lea.vmem (!%p2557_p11), [#allocation4], %s1561_s28 }
  0x3a   : > { %2392 = dma.done.wait (%p2541_p4), %s202_s30, 2048  }
  0x3b   : > { %2394 = vsyncadd (%p2541_p4), %s202_s30, 4294965248 }
  0x3c   : > { %2396 = dma.done.wait (%p2533_p1), [#allocation8], 6192  }
  0x3d   : > { %2398 = vsyncadd (%p2533_p1), [#allocation8], 4294961104  ;;  %s236_s3 = sand.u32 1, %s2409_s13   ;;  %s3065_s19 = sld [smem:[#allocation15_spill]] }
  0x3e   : > { %s1564_s12 = sshll.u32 %s236_s3, 8 }
  0x3f   : > { %s2624_s18 = scalar_lea.vmem [#allocation10], %s1564_s12 }
  0x43   : > { %p1565_p11 = scmp.ne.s32.totalorder %s3065_s19, 0 }
  0x45   : > { %243 = sbr.rel (%p1565_p11) target bundleno = 91 (0x5b), region = 48 }
  0x4a   : > { %v2453_v0 = vmov 0.0  }
  0x4b   : > { %244 = vst [vmem:[#allocation3 + $0x30] sm:$0xff] %v2453_v0 }
  0x4c   : > { %245 = vst [vmem:[#allocation3] sm:$0xff] %v2453_v0 }
  0x4d   : > { %246 = vst [vmem:[#allocation3 + $0x58] sm:$0xff] %v2453_v0 }
  0x4e   : > { %247 = vst [vmem:[#allocation3 + $0x18] sm:$0xff] %v2453_v0 }
  0x4f   : > { %248 = vst [vmem:[#allocation3 + $0x50] sm:$0xff] %v2453_v0 }
  0x50   : > { %249 = vst [vmem:[#allocation3 + $0x68] sm:$0xff] %v2453_v0 }
  0x51   : > { %250 = vst [vmem:[#allocation3 + $0x8] sm:$0xff] %v2453_v0 }
  0x52   : > { %251 = vst [vmem:[#allocation3 + $0x48] sm:$0xff] %v2453_v0 }
  0x53   : > { %252 = vst [vmem:[#allocation3 + $0x40] sm:$0xff] %v2453_v0 }
  0x54   : > { %253 = vst [vmem:[#allocation3 + $0x20] sm:$0xff] %v2453_v0 }
  0x55   : > { %254 = vst [vmem:[#allocation3 + $0x10] sm:$0xff] %v2453_v0 }
  0x56   : > { %255 = vst [vmem:[#allocation3 + $0x38] sm:$0xff] %v2453_v0 }
  0x57   : > { %256 = vst [vmem:[#allocation3 + $0x60] sm:$0xff] %v2453_v0 }
  0x58   : > { %257 = vst [vmem:[#allocation3 + $0x70] sm:$0xff] %v2453_v0 }
  0x59   : > { %258 = vst [vmem:[#allocation3 + $0x78] sm:$0xff] %v2453_v0 }
  0x5a   : > { %259 = vst [vmem:[#allocation3 + $0x28] sm:$0xff] %v2453_v0 }
  0x5b PF: > { %v1716_v1 = vld [vmem:[#allocation7 + $0xa8] sm:$0xf]  ;;  %v1933_v2 = vld [vmem:[#allocation7 + $0xb0] sm:$0xf0]  ;;  %v1704_v6 = vld [vmem:[#allocation7 + $0x90] sm:$0xf] }
  0x5c   : > { %v1812_v3 = vld [vmem:[#allocation7 + $0x168] sm:$0xf]  ;;  %v1717_v4 = vor.u32 %v1933_v2, %v1716_v1  ;;  %v1957_v5 = vld [vmem:[#allocation7 + $0x170] sm:$0xf0]  ;;  %v1930_v7 = vld [vmem:[#allocation7 + $0x98] sm:$0xf0] }
  0x5d   : > { %v2627_v8 = vor.u32 %v1957_v5, %v1812_v3  ;;  %v1800_v9 = vld [vmem:[#allocation7 + $0x150] sm:$0xf]  ;;  %v1954_v10 = vld [vmem:[#allocation7 + $0x158] sm:$0xf0]  ;;  %v1705_v11 = vor.u32 %v1930_v7, %v1704_v6  ;;  %v1692_v13 = vld [vmem:[#allocation7 + $0x78] sm:$0xf] }
  0x5e   : > { %688 = vmatpush.bf16.msra.mxu0 %v1717_v4  ;;  %2023 = vmatpush.bf16.msra.mxu3 %v1717_v4  ;;  %v2630_v12 = vor.u32 %v1954_v10, %v1800_v9  ;;  %v1927_v14 = vld [vmem:[#allocation7 + $0x80] sm:$0xf0]  ;;  %v1788_v15 = vld [vmem:[#allocation7 + $0x138] sm:$0xf]  ;;  %v1680_v19 = vld [vmem:[#allocation7 + $0x60] sm:$0xf] }
  0x5f   : > { %2031 = vmatpush.bf16.msra.mxu1 %v2627_v8  ;;  %v1951_v16 = vld [vmem:[#allocation7 + $0x140] sm:$0xf0]  ;;  %v1693_v17 = vor.u32 %v1927_v14, %v1692_v13  ;;  %v1924_v20 = vld [vmem:[#allocation7 + $0x68] sm:$0xf0]  ;;  %v1776_v21 = vld [vmem:[#allocation7 + $0x120] sm:$0xf] }
  0x60   : > { %v2633_v18 = vor.u32 %v1951_v16, %v1788_v15  ;;  %v1948_v22 = vld [vmem:[#allocation7 + $0x128] sm:$0xf0]  ;;  %v1681_v23 = vor.u32 %v1924_v20, %v1680_v19  ;;  %v1668_v25 = vld [vmem:[#allocation7 + $0x48] sm:$0xf]  ;;  %v1921_v26 = vld [vmem:[#allocation7 + $0x50] sm:$0xf0] }
  0x61   : > { %v2636_v24 = vor.u32 %v1948_v22, %v1776_v21  ;;  %v1764_v27 = vld [vmem:[#allocation7 + $0x108] sm:$0xf]  ;;  %v1945_v28 = vld [vmem:[#allocation7 + $0x110] sm:$0xf0]  ;;  %v1669_v29 = vor.u32 %v1921_v26, %v1668_v25  ;;  %v1656_v31 = vld [vmem:[#allocation7 + $0x30] sm:$0xf] }
  0x62   : > { %689 = vmatpush.bf16.msra.mxu0 %v1705_v11  ;;  %2024 = vmatpush.bf16.msra.mxu3 %v1705_v11  ;;  %v2639_v30 = vor.u32 %v1945_v28, %v1764_v27  ;;  %v1918_v32 = vld [vmem:[#allocation7 + $0x38] sm:$0xf0]  ;;  %v1752_v33 = vld [vmem:[#allocation7 + $0xf0] sm:$0xf]  ;;  %v1644_v37 = vld [vmem:[#allocation7 + $0x18] sm:$0xf] }
  0x63   : > { %2032 = vmatpush.bf16.msra.mxu1 %v2630_v12  ;;  %v1942_v34 = vld [vmem:[#allocation7 + $0xf8] sm:$0xf0]  ;;  %v1657_v35 = vor.u32 %v1918_v32, %v1656_v31  ;;  %v1915_v38 = vld [vmem:[#allocation7 + $0x20] sm:$0xf0]  ;;  %v1740_v39 = vld [vmem:[#allocation7 + $0xd8] sm:$0xf] }
  0x64   : > { %v2642_v36 = vor.u32 %v1942_v34, %v1752_v33  ;;  %v1939_v40 = vld [vmem:[#allocation7 + $0xe0] sm:$0xf0]  ;;  %v1645_v41 = vor.u32 %v1915_v38, %v1644_v37  ;;  %v1632_v43 = vld [vmem:[#allocation7] sm:$0xf]  ;;  %v1912_v44 = vld [vmem:[#allocation7 + $0x8] sm:$0xf0] }
  0x65   : > { %v2645_v42 = vor.u32 %v1939_v40, %v1740_v39  ;;  %v1728_v45 = vld [vmem:[#allocation7 + $0xc0] sm:$0xf]  ;;  %v1936_v46 = vld [vmem:[#allocation7 + $0xc8] sm:$0xf0]  ;;  %v1896_v48 = vld [vmem:[%s2611_s6 + $0x4] sm:$0xf0]  ;;  %v1633_v49 = vor.u32 %v1912_v44, %v1632_v43 }
  0x66   : > { %690 = vmatpush.bf16.msra.mxu0 %v1693_v17  ;;  %2025 = vmatpush.bf16.msra.mxu3 %v1693_v17  ;;  %v1568_v47 = vld [vmem:[%s2611_s6] sm:$0xf]  ;;  %v1900_v51 = vld [vmem:[%s2611_s6 + $0x24] sm:$0xf0]  ;;  %v1899_v52 = vld [vmem:[%s2611_s6 + $0x24] sm:$0xf]  ;;  %v2653_v53 = vor.u32 %v1936_v46, %v1728_v45 }
  0x67   : > { %2033 = vmatpush.bf16.msra.mxu1 %v2633_v18  ;;  %v1584_v50 = vld [vmem:[%s2611_s6 + $0x20] sm:$0xf]  ;;  %v1586_v54 = vld [vmem:[%s2611_s6 + $0x28] sm:$0xf0]  ;;  %v1814_v56 = vld [vmem:[#allocation7 + $0x174] sm:$0xf0]  ;;  %v2656_v58 = vor.u32 %v1896_v48, %v1568_v47 }
  0x68   : > { %v1956_v55 = vld [vmem:[#allocation7 + $0x16c] sm:$0xf]  ;;  %v2658_v59 = vor.u32 %v1900_v51, %v1584_v50  ;;  %v2660_v60 = vor.u32 %v1899_v52, %v1586_v54  ;;  %v1718_v62 = vld [vmem:[#allocation7 + $0xb4] sm:$0xf0]  ;;  %v1929_v0 = vld [vmem:[#allocation7 + $0x94] sm:$0xf] }
  0x69   : > { %v1817_v57 = vor.u32 %v1956_v55, %v1814_v56  ;;  %v1932_v61 = vld [vmem:[#allocation7 + $0xac] sm:$0xf]  ;;  %v1706_v1 = vld [vmem:[#allocation7 + $0x9c] sm:$0xf0]  ;;  %v1953_v3 = vld [vmem:[#allocation7 + $0x154] sm:$0xf] }
  0x6a   : > { %691 = vmatpush.bf16.msra.mxu0 %v1681_v23  ;;  %2026 = vmatpush.bf16.msra.mxu3 %v1681_v23  ;;  %v2664_v63 = vor.u32 %v1932_v61, %v1718_v62  ;;  %v1709_v2 = vor.u32 %v1929_v0, %v1706_v1  ;;  %v1802_v4 = vld [vmem:[#allocation7 + $0x15c] sm:$0xf0]  ;;  %v1926_v5 = vld [vmem:[#allocation7 + $0x7c] sm:$0xf]  ;;  %v1694_v6 = vld [vmem:[#allocation7 + $0x84] sm:$0xf0] }
  0x6b   : > { %2034 = vmatpush.bf16.msra.mxu1 %v2636_v24  ;;  %v1805_v7 = vor.u32 %v1953_v3, %v1802_v4  ;;  %v1576_v9 = vld [vmem:[%s2611_s6 + $0x10] sm:$0xf]  ;;  %v1923_v10 = vld [vmem:[#allocation7 + $0x64] sm:$0xf]  ;;  %v1898_v13 = vld [vmem:[%s2611_s6 + $0x14] sm:$0xf0] }
  0x6c   : > { %2039 = vmatpush.bf16.msra.mxu2 %v2664_v63  ;;  %v1682_v11 = vld [vmem:[#allocation7 + $0x6c] sm:$0xf0]  ;;  %v1902_v14 = vld [vmem:[%s2611_s6 + $0x34] sm:$0xf0]  ;;  %v1901_v15 = vld [vmem:[%s2611_s6 + $0x34] sm:$0xf]  ;;  %v2684_v19 = vor.u32 %v1898_v13, %v1576_v9 }
  0x6d   : > { %v1594_v16 = vld [vmem:[%s2611_s6 + $0x38] sm:$0xf0]  ;;  %v2682_v17 = vor.u32 %v1923_v10, %v1682_v11  ;;  %v1920_v21 = vld [vmem:[#allocation7 + $0x4c] sm:$0xf]  ;;  %v1670_v22 = vld [vmem:[#allocation7 + $0x54] sm:$0xf0] }
  0x6e   : > { %692 = vmatpush.bf16.msra.mxu0 %v1669_v29  ;;  %2027 = vmatpush.bf16.msra.mxu3 %v1669_v29  ;;  %v2688_v20 = vor.u32 %v1901_v15, %v1594_v16  ;;  %v2692_v23 = vor.u32 %v1920_v21, %v1670_v22  ;;  %v1658_v25 = vld [vmem:[#allocation7 + $0x3c] sm:$0xf0]  ;;  %v1950_v26 = vld [vmem:[#allocation7 + $0x13c] sm:$0xf]  ;;  %v1790_v27 = vld [vmem:[#allocation7 + $0x144] sm:$0xf0] }
  0x6f   : > { %2035 = vmatpush.bf16.msra.mxu1 %v2639_v30  ;;  %v1793_v29 = vor.u32 %v1950_v26, %v1790_v27  ;;  %v1646_v31 = vld [vmem:[#allocation7 + $0x24] sm:$0xf0]  ;;  %v1600_v33 = vld [vmem:[%s2611_s6 + $0x40] sm:$0xf]  ;;  %v1911_v34 = vld [vmem:[#allocation7 + $0x4] sm:$0xf] }
  0x70   : > { %2040 = vmatpush.bf16.msra.mxu2 %v1709_v2  ;;  %v1904_v37 = vld [vmem:[%s2611_s6 + $0x44] sm:$0xf0]  ;;  %v1570_v38 = vld [vmem:[%s2611_s6 + $0x8] sm:$0xf0]  ;;  %v1903_v39 = vld [vmem:[%s2611_s6 + $0x44] sm:$0xf] }
  0x71   : > { %v1602_v40 = vld [vmem:[%s2611_s6 + $0x48] sm:$0xf0]  ;;  %v2716_v43 = vor.u32 %v1904_v37, %v1600_v33  ;;  %v1820_v45 = vld [vmem:[#allocation7 + $0x170] sm:$0xf]  ;;  %v1958_v46 = vld [vmem:[#allocation7 + $0x178] sm:$0xf0] }
  0x72   : > { %693 = vmatpush.bf16.msra.mxu0 %v1657_v35  ;;  %2028 = vmatpush.bf16.msra.mxu3 %v1657_v35  ;;  %v1634_v35 = vld [vmem:[#allocation7 + $0xc] sm:$0xf0]  ;;  %v2720_v44 = vor.u32 %v1903_v39, %v1602_v40  ;;  %v1947_v47 = vld [vmem:[#allocation7 + $0x124] sm:$0xf]  ;;  %v1808_v51 = vld [vmem:[#allocation7 + $0x158] sm:$0xf] }
  0x73   : > { %2036 = vmatpush.bf16.msra.mxu1 %v2642_v36  ;;  %v1778_v48 = vld [vmem:[#allocation7 + $0x12c] sm:$0xf0]  ;;  %v1955_v52 = vld [vmem:[#allocation7 + $0x160] sm:$0xf0]  ;;  %v1796_v54 = vld [vmem:[#allocation7 + $0x140] sm:$0xf] }
  0x74   : > { %v1781_v50 = vor.u32 %v1947_v47, %v1778_v48  ;;  %v1952_v55 = vld [vmem:[#allocation7 + $0x148] sm:$0xf0]  ;;  %v1784_v0 = vld [vmem:[#allocation7 + $0x128] sm:$0xf]  ;;  %v1949_v1 = vld [vmem:[#allocation7 + $0x130] sm:$0xf0] }
  0x75   : > { %v1944_v56 = vld [vmem:[#allocation7 + $0x10c] sm:$0xf]  ;;  %v1797_v62 = vor.u32 %v1952_v55, %v1796_v54  ;;  %v1897_v3 = vld [vmem:[%s2611_s6 + $0x14] sm:$0xf]  ;;  %v1578_v4 = vld [vmem:[%s2611_s6 + $0x18] sm:$0xf0] }
  0x76   : > { %694 = vmatpush.bf16.msra.mxu0 %v1645_v41  ;;  %2029 = vmatpush.bf16.msra.mxu3 %v1645_v41  ;;  %v2714_v41 = vor.u32 %v1911_v34, %v1634_v35  ;;  %v2738_v9 = vor.u32 %v1897_v3, %v1578_v4  ;;  %v1724_v11 = vld [vmem:[#allocation7 + $0xb0] sm:$0xf]  ;;  %v1941_v16 = vld [vmem:[#allocation7 + $0xf4] sm:$0xf]  ;;  %v1760_v22 = vld [vmem:[#allocation7 + $0xf8] sm:$0xf] }
  0x77   : > { %2037 = vmatpush.bf16.msra.mxu1 %v2645_v42  ;;  %v1772_v13 = vld [vmem:[#allocation7 + $0x110] sm:$0xf]  ;;  %v1742_v26 = vld [vmem:[#allocation7 + $0xe4] sm:$0xf0]  ;;  %v1931_v33 = vld [vmem:[#allocation7 + $0xa0] sm:$0xf0] }
  0x78   : > { %v1935_v34 = vld [vmem:[#allocation7 + $0xc4] sm:$0xf]  ;;  %v1730_v35 = vld [vmem:[#allocation7 + $0xcc] sm:$0xf0]  ;;  %v1937_v39 = vld [vmem:[#allocation7 + $0xd0] sm:$0xf0] }
  0x79   : > { %v1616_v40 = vld [vmem:[%s2611_s6 + $0x60] sm:$0xf]  ;;  %v1618_v47 = vld [vmem:[%s2611_s6 + $0x68] sm:$0xf0]  ;;  %v1925_v54 = vld [vmem:[#allocation7 + $0x70] sm:$0xf0] }
  0x7a   : > { %695 = vmatpush.bf16.msra.mxu0 %v1633_v49  ;;  %2030 = vmatpush.bf16.msra.mxu3 %v1633_v49  ;;  %v1821_v49 = vor.u32 %v1958_v46, %v1820_v45  ;;  %v1908_v45 = vld [vmem:[%s2611_s6 + $0x64] sm:$0xf0]  ;;  %v1907_v46 = vld [vmem:[%s2611_s6 + $0x64] sm:$0xf]  ;;  %v1700_v48 = vld [vmem:[#allocation7 + $0x80] sm:$0xf] }
  0x7b   : > { %2038 = vmatpush.bf16.msra.mxu1 %v2653_v53  ;;  %v1626_v4 = vld [vmem:[%s2611_s6 + $0x78] sm:$0xf0]  ;;  %s3066_s25 = sld [smem:[#allocation15_spill]] }
  0x7d   : > { %696 = vmatmul.bf16.vlgmr.msra.gmra.mxu0 %v2656_v58  ;;  %706 = vmatmul.bf16.vlgmr.msra.gmra.mxu3 %v2658_v59 }
  0x7e   : > { %737 = vmatpush.bf16.msrb.mxu0 %v2627_v8  ;;  %835 = vmatpush.bf16.msrb.mxu3 %v1817_v57  ;;  %v2672_v8 = vor.u32 %v1926_v5, %v1694_v6  ;;  %v1766_v57 = vld [vmem:[#allocation7 + $0x114] sm:$0xf0]  ;;  %v1905_v5 = vld [vmem:[%s2611_s6 + $0x54] sm:$0xf]  ;;  %v1610_v6 = vld [vmem:[%s2611_s6 + $0x58] sm:$0xf0] }
  0x7f   : > { %755 = vmatmul.bf16.vlgmr.msra.gmra.mxu1 %v2660_v60  ;;  %v1769_v61 = vor.u32 %v1944_v56, %v1766_v57  ;;  %v2740_v10 = vor.u32 %v1905_v5, %v1610_v6  ;;  %v1676_v56 = vld [vmem:[#allocation7 + $0x50] sm:$0xf]  ;;  %v1922_v57 = vld [vmem:[#allocation7 + $0x58] sm:$0xf0]  ;;  %v1652_v5 = vld [vmem:[#allocation7 + $0x20] sm:$0xf] }
  0x80   : > { %2041 = vmatpush.bf16.msra.mxu2 %v2672_v8  ;;  %933 = vmatpush.bf16.msrb.mxu1 %v1821_v49  ;;  %v1928_v49 = vld [vmem:[#allocation7 + $0x88] sm:$0xf0] }
  0x81   : > { %v1916_v6 = vld [vmem:[#allocation7 + $0x28] sm:$0xf0]  ;;  %s1822_s26 = sshll.u32 %s3066_s25, 7  ;;  %p1824_p1 = scmp.ne.s32.totalorder %s3066_s25, 1 }
  0x82   : > { %738 = vmatpush.bf16.msrb.mxu0 %v2630_v12  ;;  %836 = vmatpush.bf16.msrb.mxu3 %v1805_v7  ;;  %v1592_v12 = vld [vmem:[%s2611_s6 + $0x30] sm:$0xf]  ;;  %v1785_v7 = vor.u32 %v1949_v1, %v1784_v0  ;;  %v1910_v1 = vld [vmem:[%s2611_s6 + $0x74] sm:$0xf0]  ;;  %s999_s27 = sshra.s32 %s1822_s26, 3 }
  0x83   : > { %v1624_v0 = vld [vmem:[%s2611_s6 + $0x70] sm:$0xf]  ;;  %s1823_s29 = sshll.u32 %s999_s27, 2 }
  0x84   : > { %2042 = vmatpush.bf16.msra.mxu2 %v2682_v17  ;;  %s2795_s8 = scalar_lea.vmem [#allocation2], %s1823_s29 }
  0x86   : > { %739 = vmatpush.bf16.msrb.mxu0 %v2633_v18  ;;  %v2686_v18 = vor.u32 %v1902_v14, %v1592_v12  ;;  %837 = vmatpush.bf16.msrb.mxu3 %v1793_v29  ;;  %v1946_v12 = vld [vmem:[#allocation7 + $0x118] sm:$0xf0] }
  0x87   : > { %v1934_v14 = vld [vmem:[#allocation7 + $0xb8] sm:$0xf0]  ;;  %v1773_v15 = vor.u32 %v1946_v12, %v1772_v13  ;;  %v1653_v13 = vor.u32 %v1916_v6, %v1652_v5  ;;  %v1640_v12 = vld [vmem:[#allocation7 + $0x8] sm:$0xf] }
  0x88   : > { %2043 = vmatpush.bf16.msra.mxu2 %v2692_v23  ;;  %v1725_v27 = vor.u32 %v1934_v14, %v1724_v11  ;;  %v1913_v14 = vld [vmem:[#allocation7 + $0x10] sm:$0xf0] }
  0x8a   : > { %740 = vmatpush.bf16.msrb.mxu0 %v2636_v24  ;;  %v1917_v24 = vld [vmem:[#allocation7 + $0x34] sm:$0xf]  ;;  %838 = vmatpush.bf16.msrb.mxu3 %v1781_v50 }
  0x8b   : > { %v2699_v28 = vor.u32 %v1917_v24, %v1658_v25  ;;  %v1938_v25 = vld [vmem:[#allocation7 + $0xdc] sm:$0xf] }
  0x8c   : > { %v1745_v29 = vor.u32 %v1938_v25, %v1742_v26 }
  0x8d   : > { %701 = vmatmul.bf16.gmra.mxu0 %v2684_v19  ;;  %711 = vmatmul.bf16.gmra.mxu3 %v2686_v18 }
  0x8e   : > { %741 = vmatpush.bf16.msrb.mxu0 %v2639_v30  ;;  %v1914_v30 = vld [vmem:[#allocation7 + $0x1c] sm:$0xf]  ;;  %2044 = vmatpush.bf16.msra.mxu2 %v2699_v28 }
  0x8f   : > { %760 = vmatmul.bf16.gmra.mxu1 %v2688_v20  ;;  %v2703_v32 = vor.u32 %v1914_v30, %v1646_v31  ;;  %839 = vmatpush.bf16.msrb.mxu3 %v1769_v61  ;;  %v1748_v30 = vld [vmem:[#allocation7 + $0xe0] sm:$0xf]  ;;  %v1940_v31 = vld [vmem:[#allocation7 + $0xe8] sm:$0xf0]  ;;  %v1677_v61 = vor.u32 %v1922_v57, %v1676_v56 }
  0x92   : > { %742 = vmatpush.bf16.msrb.mxu0 %v2642_v36  ;;  %v1895_v36 = vld [vmem:[%s2611_s6 + $0x4] sm:$0xf]  ;;  %2045 = vmatpush.bf16.msra.mxu2 %v2703_v32 }
  0x96   : > { %743 = vmatpush.bf16.msrb.mxu0 %v2645_v42  ;;  %v2718_v42 = vor.u32 %v1895_v36, %v1570_v38  ;;  %2046 = vmatpush.bf16.msra.mxu2 %v2714_v41  ;;  %v1733_v36 = vor.u32 %v1935_v34, %v1730_v35  ;;  %v1736_v38 = vld [vmem:[#allocation7 + $0xc8] sm:$0xf] }
  0x97   : > { %v1737_v50 = vor.u32 %v1937_v39, %v1736_v38 }
  0x99   : > { %804 = vmatmul.bf16.vlgmr.msra.gmra.mxu2 %v2658_v59 }
  0x9a   : > { %744 = vmatpush.bf16.msrb.mxu0 %v2653_v53  ;;  %v1809_v53 = vor.u32 %v1955_v52, %v1808_v51  ;;  %v2753_v51 = vor.u32 %v1908_v45, %v1616_v40  ;;  %v1701_v52 = vor.u32 %v1928_v49, %v1700_v48 }
  0x9c   : > { %934 = vmatpush.bf16.msrb.mxu1 %v1809_v53  ;;  %v1688_v53 = vld [vmem:[#allocation7 + $0x68] sm:$0xf] }
  0x9d   : > { %716 = vmatmul.bf16.gmra.mxu3 %v2716_v43  ;;  %745 = vmatmul.bf16.vlgmr.msrb.gmra.mxu0 %v2718_v42  ;;  %v1689_v55 = vor.u32 %v1925_v54, %v1688_v53 }
  0x9e   : > { %786 = vmatpush.bf16.msra.mxu0 %v2664_v63  ;;  %v1608_v63 = vld [vmem:[%s2611_s6 + $0x50] sm:$0xf] }
  0x9f   : > { %765 = vmatmul.bf16.gmra.mxu1 %v2720_v44 }
  0xa0   : > { %935 = vmatpush.bf16.msrb.mxu1 %v1797_v62  ;;  %v1664_v62 = vld [vmem:[#allocation7 + $0x38] sm:$0xf] }
  0xa2   : > { %787 = vmatpush.bf16.msra.mxu0 %v1709_v2  ;;  %v1906_v2 = vld [vmem:[%s2611_s6 + $0x54] sm:$0xf0] }
  0xa4   : > { %936 = vmatpush.bf16.msrb.mxu1 %v1785_v7  ;;  %v2765_v7 = vor.u32 %v1910_v1, %v1624_v0 }
  0xa6   : > { %788 = vmatpush.bf16.msra.mxu0 %v2672_v8  ;;  %v2736_v8 = vor.u32 %v1906_v2, %v1608_v63  ;;  %v1919_v63 = vld [vmem:[#allocation7 + $0x40] sm:$0xf0]  ;;  %v1909_v2 = vld [vmem:[%s2611_s6 + $0x74] sm:$0xf] }
  0xa7   : > { %v1665_v3 = vor.u32 %v1919_v63, %v1664_v62  ;;  %v2767_v11 = vor.u32 %v1909_v2, %v1626_v4 }
  0xa8   : > { %937 = vmatpush.bf16.msrb.mxu1 %v1773_v15  ;;  %v1641_v15 = vor.u32 %v1913_v14, %v1640_v12 }
  0xa9   : > { %809 = vmatmul.bf16.gmra.mxu2 %v2686_v18 }
  0xaa   : > { %789 = vmatpush.bf16.msra.mxu0 %v2682_v17  ;;  %v1754_v17 = vld [vmem:[#allocation7 + $0xfc] sm:$0xf0] }
  0xab   : > { %v1757_v21 = vor.u32 %v1941_v16, %v1754_v17  ;;  %v340_v16 = vld [vmem:[#allocation9] sm:$0x7] }
  0xad   : > { %721 = vmatmul.bf16.gmra.mxu3 %v2736_v8  ;;  %750 = vmatmul.bf16.gmra.mxu0 %v2738_v9 }
  0xae   : > { %790 = vmatpush.bf16.msra.mxu0 %v2692_v23  ;;  %v1943_v23 = vld [vmem:[#allocation7 + $0x100] sm:$0xf0]  ;;  %840 = vmatpush.bf16.msrb.mxu3 %v1757_v21  ;;  %v2781_v21 = vunpack.c.l.bf16 %v340_v16 }
  0xaf   : > { %770 = vmatmul.bf16.gmra.mxu1 %v2740_v10  ;;  %v1761_v24 = vor.u32 %v1943_v23, %v1760_v22 }
  0xb1   : > { %938 = vmatpush.bf16.msrb.mxu1 %v1761_v24 }
  0xb2   : > { %791 = vmatpush.bf16.msra.mxu0 %v2699_v28  ;;  %v1712_v28 = vld [vmem:[#allocation7 + $0x98] sm:$0xf]  ;;  %841 = vmatpush.bf16.msrb.mxu3 %v1745_v29 }
  0xb3   : > { %v1713_v37 = vor.u32 %v1931_v33, %v1712_v28 }
  0xb6   : > { %792 = vmatpush.bf16.msra.mxu0 %v2703_v32  ;;  %v1749_v32 = vor.u32 %v1940_v31, %v1748_v30  ;;  %842 = vmatpush.bf16.msrb.mxu3 %v1733_v36 }
  0xb8   : > { %939 = vmatpush.bf16.msrb.mxu1 %v1749_v32 }
  0xb9   : > { %814 = vmatmul.bf16.gmra.mxu2 %v2716_v43 }
  0xba   : > { %793 = vmatpush.bf16.msra.mxu0 %v2714_v41  ;;  %v2755_v41 = vor.u32 %v1907_v46, %v1618_v47 }
  0xbc   : > { %940 = vmatpush.bf16.msrb.mxu1 %v1737_v50 }
  0xbd   : > { %726 = vmatmul.bf16.gmra.mxu3 %v2753_v51  ;;  %794 = vmatmul.bf16.vlgmr.msra.gmra.mxu0 %v2656_v58 }
  0xbe   : > { %884 = vmatpush.bf16.msrb.mxu0 %v1725_v27 }
  0xbf   : > { %775 = vmatmul.bf16.gmra.mxu1 %v2755_v41 }
  0xc2   : > { %885 = vmatpush.bf16.msrb.mxu0 %v1713_v37 }
  0xc6   : > { %886 = vmatpush.bf16.msrb.mxu0 %v1701_v52 }
  0xc9   : > { %819 = vmatmul.bf16.gmra.mxu2 %v2736_v8 }
  0xca   : > { %887 = vmatpush.bf16.msrb.mxu0 %v1689_v55 }
  0xcd   : > { %731 = vmatmul.bf16.gmra.mxu3 %v2765_v7  ;;  %799 = vmatmul.bf16.gmra.mxu0 %v2684_v19 }
  0xce   : > { %888 = vmatpush.bf16.msrb.mxu0 %v1677_v61 }
  0xcf   : > { %780 = vmatmul.bf16.gmra.mxu1 %v2767_v11 }
  0xd2   : > { %889 = vmatpush.bf16.msrb.mxu0 %v1665_v3 }
  0xd6   : > { %890 = vmatpush.bf16.msrb.mxu0 %v1653_v13 }
  0xd9   : > { %824 = vmatmul.bf16.gmra.mxu2 %v2753_v51 }
  0xda   : > { %891 = vmatpush.bf16.msrb.mxu0 %v1641_v15 }
  0xdd   : > { %843 = vmatmul.bf16.vlgmr.msrb.gmra.mxu3 %v2718_v42  ;;  %892 = vmatmul.bf16.vlgmr.msrb.gmra.mxu0 %v2656_v58  ;;  %v343_v58 = vperm.slane %v2781_v21, 0 }
  0xdf   : > { %941 = vmatmul.bf16.vlgmr.msrb.gmra.mxu1 %v2718_v42 }
  0xe9   : > { %829 = vmatmul.bf16.gmra.mxu2 %v2765_v7 }
  0xed   : > { %848 = vmatmul.bf16.gmra.mxu3 %v2738_v9  ;;  %897 = vmatmul.bf16.gmra.mxu0 %v2684_v19  ;;  %v2787_v19 = vperm.slane %v343_v58, 0 }
  0xef   : > { %946 = vmatmul.bf16.gmra.mxu1 %v2738_v9 }
  0xfa   : > { %v697_v17 = vpop.f32.mrf.mxu0 }
  0xfc   : > { %v756_v22 = vpop.f32.mrf.mxu1 }
  0xfd   : > { %853 = vmatmul.bf16.gmra.mxu3 %v2660_v60  ;;  %902 = vmatmul.bf16.gmra.mxu0 %v2658_v59 }
  0xff   : > { %951 = vmatmul.bf16.gmra.mxu1 %v2660_v60 }
 0x100   : > { %v707_v42 = vpop.f32.mrf.mxu3 }
 0x101   : > { %v708_v24 = vadd.f32 %v707_v42, %v2787_v19 }
 0x102   : > { %v699_v23 = vpop.f32.mrf.mxu0 }
 0x103   : > { %v757_v28 = vadd.f32 %v756_v22, %v708_v24  ;;  %v700_v45 = vadd.f32 %v699_v23, %v2787_v19 }
 0x104   : > { %v758_v9 = vpop.f32.mrf.mxu1 }
 0x108   : > { %v709_v25 = vpop.f32.mrf.mxu3 }
 0x109   : > { %v710_v26 = vadd.f32 %v709_v25, %v2787_v19 }
 0x10a   : > { %v702_v27 = vpop.f32.mrf.mxu0 }
 0x10b   : > { %v759_v59 = vadd.f32 %v758_v9, %v710_v26  ;;  %v703_v61 = vadd.f32 %v702_v27, %v2787_v19 }
 0x10c   : > { %v761_v29 = vpop.f32.mrf.mxu1 }
 0x10d   : > { %v1989_v60 = vpack.c.bf16 %v759_v59, %v757_v28  ;;  %858 = vmatmul.bf16.gmra.mxu3 %v2688_v20  ;;  %907 = vmatmul.bf16.gmra.mxu0 %v2686_v18  ;;  %v345_v59 = vperm.slane %v2781_v21, 4 }
 0x10f   : > { %956 = vmatmul.bf16.gmra.mxu1 %v2688_v20  ;;  %2017 = vst [vmem:[%s2795_s8 + $0x10] sm:$0xff] %v1989_v60   ;;  %v698_v20 = vadd.f32 %v697_v17, %v2787_v19 }
 0x110   : > { %v712_v30 = vpop.f32.mrf.mxu3 }
 0x111   : > { %v713_v34 = vadd.f32 %v712_v30, %v2787_v19  ;;  %v2831_v30 = vperm.slane %v345_v59, 0 }
 0x112   : > { %v704_v31 = vpop.f32.mrf.mxu0 }
 0x113   : > { %v762_v36 = vadd.f32 %v761_v29, %v713_v34  ;;  %v705_v63 = vadd.f32 %v704_v31, %v2787_v19  ;;  %v344_v29 = vperm.slane %v2781_v21, 2 }
 0x114   : > { %v763_v33 = vpop.f32.mrf.mxu1 }
 0x118   : > { %v714_v35 = vpop.f32.mrf.mxu3 }
 0x119   : > { %v715_v32 = vadd.f32 %v714_v35, %v2787_v19 }
 0x11a   : > { %v746_v37 = vpop.f32.mrf.mxu0 }
 0x11b   : > { %v764_v38 = vadd.f32 %v763_v33, %v715_v32  ;;  %v747_v47 = vadd.f32 %v746_v37, %v698_v20  ;;  %v2833_v33 = vperm.slane %v344_v29, 0 }
 0x11c   : > { %v766_v18 = vpop.f32.mrf.mxu1 }
 0x11d   : > { %v1994_v39 = vpack.c.bf16 %v764_v38, %v762_v36  ;;  %863 = vmatmul.bf16.gmra.mxu3 %v2720_v44  ;;  %912 = vmatmul.bf16.gmra.mxu0 %v2716_v43 }
 0x11f   : > { %961 = vmatmul.bf16.gmra.mxu1 %v2720_v44  ;;  %2018 = vst [vmem:[%s2795_s8 + $0x18] sm:$0xff] %v1994_v39  }
 0x120   : > { %v717_v40 = vpop.f32.mrf.mxu3 }
 0x121   : > { %v718_v52 = vadd.f32 %v717_v40, %v2787_v19 }
 0x122   : > { %v748_v46 = vpop.f32.mrf.mxu0 }
 0x123   : > { %v749_v48 = vadd.f32 %v748_v46, %v700_v45  ;;  %v767_v44 = vadd.f32 %v766_v18, %v718_v52  ;;  %v805_v46 = vpop.f32.mrf.mxu2 }
 0x124   : > { %v768_v49 = vpop.f32.mrf.mxu1 }
 0x125   : > { %v1979_v50 = vpack.c.bf16 %v749_v48, %v747_v47 }
 0x127   : > { %1980 = vst [vmem:[%s2795_s8] sm:$0xff] %v1979_v50  }
 0x128   : > { %v719_v53 = vpop.f32.mrf.mxu3 }
 0x129   : > { %v720_v43 = vadd.f32 %v719_v53, %v2787_v19 }
 0x12a   : > { %v751_v54 = vpop.f32.mrf.mxu0 }
 0x12b   : > { %v769_v55 = vadd.f32 %v768_v49, %v720_v43  ;;  %v752_v1 = vadd.f32 %v751_v54, %v703_v61 }
 0x12c   : > { %v771_v56 = vpop.f32.mrf.mxu1 }
 0x12d   : > { %v1999_v57 = vpack.c.bf16 %v769_v55, %v767_v44  ;;  %868 = vmatmul.bf16.gmra.mxu3 %v2740_v10  ;;  %917 = vmatmul.bf16.gmra.mxu0 %v2736_v8 }
 0x12f   : > { %966 = vmatmul.bf16.gmra.mxu1 %v2740_v10  ;;  %2019 = vst [vmem:[%s2795_s8 + $0x20] sm:$0xff] %v1999_v57   ;;  %v807_v57 = vpop.f32.mrf.mxu2 }
 0x130   : > { %v722_v62 = vpop.f32.mrf.mxu3 }
 0x131   : > { %v723_v5 = vadd.f32 %v722_v62, %v2787_v19 }
 0x132   : > { %v753_v0 = vpop.f32.mrf.mxu0 }
 0x133   : > { %v754_v2 = vadd.f32 %v753_v0, %v705_v63  ;;  %v772_v10 = vadd.f32 %v771_v56, %v723_v5 }
 0x134   : > { %v773_v3 = vpop.f32.mrf.mxu1 }
 0x135   : > { %v1984_v4 = vpack.c.bf16 %v754_v2, %v752_v1 }
 0x137   : > { %2016 = vst [vmem:[%s2795_s8 + $0x8] sm:$0xff] %v1984_v4  }
 0x138   : > { %v724_v6 = vpop.f32.mrf.mxu3 }
 0x139   : > { %v725_v8 = vadd.f32 %v724_v6, %v2787_v19 }
 0x13a   : > { %v795_v13 = vpop.f32.mrf.mxu0 }
 0x13b   : > { %v774_v12 = vadd.f32 %v773_v3, %v725_v8  ;;  %v796_v36 = vadd.f32 %v795_v13, %v2833_v33  ;;  %v810_v8 = vpop.f32.mrf.mxu2 }
 0x13c   : > { %v776_v14 = vpop.f32.mrf.mxu1 }
 0x13d   : > { %v2004_v15 = vpack.c.bf16 %v774_v12, %v772_v10  ;;  %873 = vmatmul.bf16.gmra.mxu3 %v2755_v41  ;;  %922 = vmatmul.bf16.gmra.mxu0 %v2753_v51 }
 0x13f   : > { %971 = vmatmul.bf16.gmra.mxu1 %v2755_v41  ;;  %2020 = vst [vmem:[%s2795_s8 + $0x28] sm:$0xff] %v2004_v15  }
 0x140   : > { %v727_v16 = vpop.f32.mrf.mxu3 }
 0x141   : > { %v728_v58 = vadd.f32 %v727_v16, %v2787_v19 }
 0x142   : > { %v797_v17 = vpop.f32.mrf.mxu0 }
 0x143   : > { %v777_v24 = vadd.f32 %v776_v14, %v728_v58  ;;  %v798_v47 = vadd.f32 %v797_v17, %v2833_v33  ;;  %v812_v58 = vpop.f32.mrf.mxu2 }
 0x144   : > { %v778_v22 = vpop.f32.mrf.mxu1 }
 0x148   : > { %v729_v42 = vpop.f32.mrf.mxu3 }
 0x149   : > { %v730_v23 = vadd.f32 %v729_v42, %v2787_v19  ;;  %v806_v42 = vadd.f32 %v805_v46, %v2833_v33 }
 0x14a   : > { %v800_v9 = vpop.f32.mrf.mxu0 }
 0x14b   : > { %v779_v25 = vadd.f32 %v778_v22, %v730_v23  ;;  %v801_v44 = vadd.f32 %v800_v9, %v2833_v33 }
 0x14c   : > { %v781_v26 = vpop.f32.mrf.mxu1 }
 0x14d   : > { %v2009_v27 = vpack.c.bf16 %v779_v25, %v777_v24  ;;  %878 = vmatmul.bf16.gmra.mxu3 %v2767_v11  ;;  %927 = vmatmul.bf16.gmra.mxu0 %v2765_v7  ;;  %v808_v24 = vadd.f32 %v807_v57, %v2833_v33 }
 0x14f   : > { %976 = vmatmul.bf16.gmra.mxu1 %v2767_v11  ;;  %2021 = vst [vmem:[%s2795_s8 + $0x30] sm:$0xff] %v2009_v27  }
 0x150   : > { %v732_v51 = vpop.f32.mrf.mxu3 }
 0x151   : > { %v733_v60 = vadd.f32 %v732_v51, %v2787_v19 }
 0x152   : > { %v802_v41 = vpop.f32.mrf.mxu0 }
 0x153   : > { %v782_v11 = vadd.f32 %v781_v26, %v733_v60  ;;  %v803_v2 = vadd.f32 %v802_v41, %v2833_v33  ;;  %v815_v60 = vpop.f32.mrf.mxu2 }
 0x154   : > { %v783_v28 = vpop.f32.mrf.mxu1 }
 0x158   : > { %v734_v31 = vpop.f32.mrf.mxu3 }
 0x159   : > { %v735_v7 = vadd.f32 %v734_v31, %v2787_v19 }
 0x15a   : > { %v893_v34 = vpop.f32.mrf.mxu0 }
 0x15b   : > { %v784_v35 = vadd.f32 %v783_v28, %v735_v7  ;;  %v894_v32 = vadd.f32 %v893_v34, %v2831_v30 }
 0x15c   : > { %v942_v37 = vpop.f32.mrf.mxu1 }
 0x15d   : > { %v2014_v38 = vpack.c.bf16 %v784_v35, %v782_v11  ;;  %v2838_v18 = vadd.f32 %v942_v37, %v894_v32  ;;  %v811_v35 = vadd.f32 %v810_v8, %v2833_v33 }
 0x15f   : > { %2022 = vst [vmem:[%s2795_s8 + $0x38] sm:$0xff] %v2014_v38  }
 0x160   : > { %v844_v21 = vpop.f32.mrf.mxu3 }
 0x161   : > { %v2841_v39 = vadd.f32 %v844_v21, %v796_v36  ;;  %v813_v36 = vadd.f32 %v812_v58, %v2833_v33  ;;  %v2895_v21 = vpop.f32.mrf.mxu2 }
 0x162   : > { %v895_v20 = vpop.f32.mrf.mxu0 }
 0x163   : > { %v896_v40 = vadd.f32 %v895_v20, %v2831_v30 }
 0x164   : > { %v944_v45 = vpop.f32.mrf.mxu1 }
 0x165   : > { %v2844_v19 = vadd.f32 %v944_v45, %v896_v40 }
 0x168   : > { %v846_v49 = vpop.f32.mrf.mxu3 }
 0x169   : > { %v2849_v50 = vadd.f32 %v846_v49, %v798_v47  ;;  %v820_v57 = vpop.f32.mrf.mxu2 }
 0x16a   : > { %v898_v52 = vpop.f32.mrf.mxu0 }
 0x16b   : > { %v899_v53 = vadd.f32 %v898_v52, %v2831_v30 }
 0x16c   : > { %v947_v43 = vpop.f32.mrf.mxu1 }
 0x16d   : > { %v2855_v55 = vadd.f32 %v947_v43, %v899_v53  ;;  %v816_v53 = vadd.f32 %v815_v60, %v2833_v33 }
 0x170   : > { %v849_v56 = vpop.f32.mrf.mxu3 }
 0x171   : > { %v2857_v61 = vadd.f32 %v849_v56, %v801_v44 }
 0x172   : > { %v900_v62 = vpop.f32.mrf.mxu0 }
 0x173   : > { %v901_v63 = vadd.f32 %v900_v62, %v2831_v30 }
 0x174   : > { %v949_v0 = vpop.f32.mrf.mxu1 }
 0x175   : > { %v2860_v1 = vadd.f32 %v949_v0, %v901_v63 }
 0x177   : > { %v1044_v3 = vpack.c.bf16 %v2860_v1, %v2855_v55  ;;  %v1021_v1 = vld [vmem:[#allocation3 + $0x58] sm:$0xff] }
 0x178   : > { %v851_v4 = vpop.f32.mrf.mxu3 }
 0x179   : > { %v2865_v5 = vadd.f32 %v851_v4, %v803_v2  ;;  %v822_v4 = vpop.f32.mrf.mxu2 }
 0x17a   : > { %v903_v6 = vpop.f32.mrf.mxu0 }
 0x17b   : > { %v904_v13 = vadd.f32 %v903_v6, %v2831_v30 }
 0x17c   : > { %v952_v10 = vpop.f32.mrf.mxu1 }
 0x17d   : > { %v2870_v14 = vadd.f32 %v952_v10, %v904_v13 }
 0x180   : > { %v854_v15 = vpop.f32.mrf.mxu3 }
 0x181   : > { %v2879_v26 = vadd.f32 %v854_v15, %v806_v42  ;;  %v825_v10 = vpop.f32.mrf.mxu2 }
 0x182   : > { %v905_v16 = vpop.f32.mrf.mxu0 }
 0x183   : > { %v906_v17 = vadd.f32 %v905_v16, %v2831_v30 }
 0x184   : > { %v954_v22 = vpop.f32.mrf.mxu1 }
 0x185   : > { %v2874_v23 = vadd.f32 %v954_v22, %v906_v17 }
 0x187   : > { %v1045_v9 = vpack.c.bf16 %v2874_v23, %v2870_v14  ;;  %v3069_v14 = vpack.c.bf16 %v2865_v5, %v2857_v61  ;;  %v3070_v23 = vpack.c.bf16 %v2849_v50, %v2841_v39  ;;  %v1020_v50 = vld [vmem:[#allocation3] sm:$0xff] }
 0x188   : > { %v856_v25 = vpop.f32.mrf.mxu3 }
 0x189   : > { %v2881_v27 = vadd.f32 %v856_v25, %v808_v24  ;;  %v827_v58 = vpop.f32.mrf.mxu2 }
 0x18a   : > { %v908_v51 = vpop.f32.mrf.mxu0 }
 0x18b   : > { %v909_v41 = vadd.f32 %v908_v51, %v2831_v30 }
 0x18c   : > { %v957_v28 = vpop.f32.mrf.mxu1 }
 0x18d   : > { %v2886_v29 = vadd.f32 %v957_v28, %v909_v41 }
 0x190   : > { %v859_v31 = vpop.f32.mrf.mxu3 }
 0x191   : > { %v2897_v20 = vadd.f32 %v859_v31, %v811_v35  ;;  %v830_v41 = vpop.f32.mrf.mxu2 }
 0x192   : > { %v910_v7 = vpop.f32.mrf.mxu0 }
 0x193   : > { %v911_v34 = vadd.f32 %v910_v7, %v2831_v30 }
 0x194   : > { %v959_v11 = vpop.f32.mrf.mxu1 }
 0x195   : > { %v2890_v32 = vadd.f32 %v959_v11, %v911_v34 }
 0x197   : > { %v1046_v37 = vpack.c.bf16 %v2890_v32, %v2886_v29  ;;  %v3068_v29 = vpack.c.bf16 %v2844_v19, %v2838_v18  ;;  %v1019_v18 = vld [vmem:[#allocation3 + $0x30] sm:$0xff] }
 0x198   : > { %v861_v38 = vpop.f32.mrf.mxu3  ;;  %v1023_v32 = vld [vmem:[#allocation3 + $0x50] sm:$0xff] }
 0x199   : > { %v2899_v40 = vadd.f32 %v861_v38, %v813_v36 }
 0x19a   : > { %v913_v45 = vpop.f32.mrf.mxu0 }
 0x19b   : > { %v914_v46 = vadd.f32 %v913_v45, %v2831_v30  ;;  %v1038_v49 = vpack.c.bf16 %v2899_v40, %v2897_v20  ;;  %v832_v45 = vpop.f32.mrf.mxu2  ;;  %v1024_v20 = vld [vmem:[#allocation3 + $0x68] sm:$0xff] }
 0x19c   : > { %v962_v47 = vpop.f32.mrf.mxu1 }
 0x19d   : > { %v2904_v52 = vadd.f32 %v962_v47, %v914_v46 }
 0x1a0   : > { %v864_v43 = vpop.f32.mrf.mxu3 }
 0x1a1   : > { %v2907_v44 = vadd.f32 %v864_v43, %v816_v53  ;;  %v831_v53 = vadd.f32 %v830_v41, %v2833_v33 }
 0x1a2   : > { %v915_v56 = vpop.f32.mrf.mxu0 }
 0x1a4   : > { %v964_v62 = vpop.f32.mrf.mxu1 }
 0x1a8   : > { %v866_v63 = vpop.f32.mrf.mxu3 }
 0x1aa   : > { %v918_v0 = vpop.f32.mrf.mxu0 }
 0x1ab   : > { %v919_v54 = vadd.f32 %v918_v0, %v2831_v30 }
 0x1ac   : > { %v967_v2 = vpop.f32.mrf.mxu1 }
 0x1ad   : > { %v968_v41 = vadd.f32 %v967_v2, %v919_v54 }
 0x1b0   : > { %v869_v6 = vpop.f32.mrf.mxu3 }
 0x1b2   : > { %v920_v8 = vpop.f32.mrf.mxu0 }
 0x1b4   : > { %v969_v13 = vpop.f32.mrf.mxu1 }
 0x1b8   : > { %v871_v15 = vpop.f32.mrf.mxu3 }
 0x1ba   : > { %v923_v16 = vpop.f32.mrf.mxu0 }
 0x1bb   : > { %v924_v7 = vadd.f32 %v923_v16, %v2831_v30  ;;  %v833_v16 = vadd.f32 %v832_v45, %v2833_v33 }
 0x1bc   : > { %v972_v17 = vpop.f32.mrf.mxu1 }
 0x1bd   : > { %v973_v46 = vadd.f32 %v972_v17, %v924_v7  ;;  %v828_v17 = vadd.f32 %v827_v58, %v2833_v33 }
 0x1c0   : > { %v874_v22 = vpop.f32.mrf.mxu3 }
 0x1c2   : > { %v925_v42 = vpop.f32.mrf.mxu0 }
 0x1c3   : > { %v926_v34 = vadd.f32 %v925_v42, %v2831_v30 }
 0x1c4   : > { %v974_v24 = vpop.f32.mrf.mxu1 }
 0x1c5   : > { %v975_v47 = vadd.f32 %v974_v24, %v926_v34  ;;  %v916_v24 = vadd.f32 %v915_v56, %v2831_v30 }
 0x1c7   : > { %v1049_v42 = vpack.c.bf16 %v975_v47, %v973_v46  ;;  %v1030_v47 = vld [vmem:[#allocation3 + $0x38] sm:$0xff] }
 0x1c8   : > { %v876_v25 = vpop.f32.mrf.mxu3 }
 0x1c9   : > { %v877_v0 = vadd.f32 %v876_v25, %v828_v17 }
 0x1ca   : > { %v928_v51 = vpop.f32.mrf.mxu0 }
 0x1cb   : > { %v929_v60 = vadd.f32 %v928_v51, %v2831_v30  ;;  %v921_v51 = vadd.f32 %v920_v8, %v2831_v30  ;;  %v821_v8 = vadd.f32 %v820_v57, %v2833_v33 }
 0x1cc   : > { %v977_v28 = vpop.f32.mrf.mxu1 }
 0x1cd   : > { %v978_v35 = vadd.f32 %v977_v28, %v929_v60  ;;  %v826_v60 = vadd.f32 %v825_v10, %v2833_v33  ;;  %v970_v7 = vadd.f32 %v969_v13, %v921_v51  ;;  %v818_v10 = vadd.f32 %v2895_v21, %v2833_v33  ;;  %v1031_v51 = vld [vmem:[#allocation3 + $0x60] sm:$0xff] }
 0x1d0   : > { %v879_v31 = vpop.f32.mrf.mxu3 }
 0x1d1   : > { %v880_v59 = vadd.f32 %v879_v31, %v831_v53  ;;  %v965_v31 = vadd.f32 %v964_v62, %v916_v24  ;;  %v1033_v24 = vld [vmem:[#allocation3 + $0x78] sm:$0xff] }
 0x1d2   : > { %v930_v11 = vpop.f32.mrf.mxu0 }
 0x1d3   : > { %v931_v36 = vadd.f32 %v930_v11, %v2831_v30  ;;  %v823_v11 = vadd.f32 %v822_v4, %v2833_v33  ;;  %v870_v30 = vadd.f32 %v869_v6, %v821_v8  ;;  %v1047_v54 = vpack.c.bf16 %v965_v31, %v2904_v52  ;;  %v1025_v52 = vld [vmem:[#allocation3 + $0x8] sm:$0xff]  ;;  %v1027_v6 = vld [vmem:[#allocation3 + $0x40] sm:$0xff] }
 0x1d4   : > { %v979_v38 = vpop.f32.mrf.mxu1  ;;  %v3067_v33 = vpack.c.bf16 %v2881_v27, %v2879_v26 }
 0x1d5   : > { %v980_v43 = vadd.f32 %v979_v38, %v931_v36  ;;  %v1029_v38 = vld [vmem:[#allocation3 + $0x10] sm:$0xff] }
 0x1d7   : > { %v1050_v12 = vpack.c.bf16 %v980_v43, %v978_v35  ;;  %v875_v35 = vadd.f32 %v874_v22, %v826_v60  ;;  %v1028_v22 = vld [vmem:[#allocation3 + $0x20] sm:$0xff] }
 0x1d8   : > { %v881_v48 = vpop.f32.mrf.mxu3 }
 0x1d9   : > { %v882_v28 = vadd.f32 %v881_v48, %v833_v16  ;;  %1067 = vmatpush.bf16.msra.mxu2 %v1050_v12  ;;  %v1048_v48 = vpack.c.bf16 %v970_v7, %v968_v41  ;;  %v872_v12 = vadd.f32 %v871_v15, %v823_v11  ;;  %v1041_v36 = vpack.c.bf16 %v877_v0, %v875_v35 }
 0x1db   : > { %v1042_v34 = vpack.c.bf16 %v882_v28, %v880_v59  ;;  %v867_v59 = vadd.f32 %v866_v63, %v818_v10  ;;  %v1040_v56 = vpack.c.bf16 %v872_v12, %v870_v30  ;;  %v1026_v63 = vld [vmem:[#allocation3 + $0x48] sm:$0xff]  ;;  %v1032_v28 = vld [vmem:[#allocation3 + $0x70] sm:$0xff] }
 0x1dd   : > { %1068 = vmatpush.bf16.msra.mxu2 %v1049_v42  ;;  %v1039_v57 = vpack.c.bf16 %v867_v59, %v2907_v44 }
 0x1e1   : > { %2074 = vmatpush.lsf.bf16.msrb.mxu2 %v1042_v34  ;;  %v1034_v34 = vld [vmem:[#allocation3 + $0x28] sm:$0xff] }
 0x1e5   : > { %1069 = vmatpush.bf16.msra.mxu2 %v1048_v48 }
 0x1e9   : > { %2075 = vmatpush.lsf.bf16.msrb.mxu2 %v1041_v36 }
 0x1ed   : > { %1070 = vmatpush.bf16.msra.mxu2 %v1047_v54 }
 0x1f1   : > { %2076 = vmatpush.lsf.bf16.msrb.mxu2 %v1040_v56 }
 0x1f5   : > { %1071 = vmatpush.bf16.msra.mxu2 %v1046_v37 }
 0x1f9   : > { %2077 = vmatpush.lsf.bf16.msrb.mxu2 %v1039_v57 }
 0x1fd   : > { %1072 = vmatpush.bf16.msra.mxu2 %v1045_v9  ;;  %v1022_v9 = vld [vmem:[#allocation3 + $0x18] sm:$0xff] }
 0x201   : > { %2078 = vmatpush.lsf.bf16.msrb.mxu2 %v1038_v49 }
 0x205   : > { %1073 = vmatpush.bf16.msra.mxu2 %v1044_v3 }
 0x209   : > { %2079 = vmatpush.lsf.bf16.msrb.mxu2 %v3067_v33 }
 0x20d   : > { %1074 = vmatpush.bf16.msra.mxu2 %v3068_v29 }
 0x211   : > { %2080 = vmatpush.lsf.bf16.msrb.mxu2 %v3069_v14 }
 0x215   : > { %2081 = vmatpush.lsf.bf16.msrb.mxu2 %v3070_v23 }
 0x217   : > { %2082 = vllmr.16.mxu2 }
 0x238   : > { %2083 = vmatmul.lmr.bf16.vlgmr.msra.gmra.16.mxu2 }
 0x240   : > { %2084 = vmatmul.lmr.bf16.gmra.16.mxu2 }
 0x248   : > { %2085 = vmatmul.lmr.bf16.gmra.16.mxu2 }
 0x250   : > { %2086 = vmatmul.lmr.bf16.gmra.16.mxu2 }
 0x258   : > { %2087 = vmatmul.lmr.bf16.gmra.16.mxu2 }
 0x260   : > { %2088 = vmatmul.lmr.bf16.gmra.16.mxu2 }
 0x268   : > { %2089 = vmatmul.lmr.bf16.gmra.16.mxu2 }
 0x270   : > { %2090 = vmatmul.lmr.bf16.gmra.16.mxu2 }
 0x278   : > { %2091 = vmatmul.lmr.bf16.gmra.16.mxu2 }
 0x280   : > { %2092 = vmatmul.lmr.bf16.gmra.16.mxu2 }
 0x288   : > { %2093 = vmatmul.lmr.bf16.gmra.16.mxu2 }
 0x290   : > { %2094 = vmatmul.lmr.bf16.gmra.16.mxu2 }
 0x298   : > { %2095 = vmatmul.lmr.bf16.gmra.16.mxu2 }
 0x2a0   : > { %2096 = vmatmul.lmr.bf16.gmra.16.mxu2 }
 0x2a8   : > { %2097 = vmatmul.lmr.bf16.gmra.16.mxu2 }
 0x2b0   : > { %2098 = vmatmul.lmr.bf16.gmra.16.mxu2 }
 0x2bb   : > { %v1076_v39 = vpop.f32.mrf.mxu2 }
 0x2bc   : > { %v1116_v19 = vadd.f32 %v1076_v39, %v1019_v18 }
 0x2be   : > { %1132 = vst [vmem:[#allocation3 + $0x30] sm:$0xff] %v1116_v19 }
 0x2c3   : > { %v1078_v55 = vpop.f32.mrf.mxu2 }
 0x2c4   : > { %v1117_v61 = vadd.f32 %v1078_v55, %v1020_v50 }
 0x2c6   : > { %1133 = vst [vmem:[#allocation3] sm:$0xff] %v1117_v61 }
 0x2cb   : > { %v1081_v3 = vpop.f32.mrf.mxu2 }
 0x2cc   : > { %v1118_v5 = vadd.f32 %v1081_v3, %v1021_v1 }
 0x2ce   : > { %1134 = vst [vmem:[#allocation3 + $0x58] sm:$0xff] %v1118_v5 }
 0x2d3   : > { %v1083_v26 = vpop.f32.mrf.mxu2 }
 0x2d4   : > { %v1119_v27 = vadd.f32 %v1083_v26, %v1022_v9 }
 0x2d6   : > { %1135 = vst [vmem:[#allocation3 + $0x18] sm:$0xff] %v1119_v27 }
 0x2db   : > { %v1086_v37 = vpop.f32.mrf.mxu2 }
 0x2dc   : > { %v1120_v21 = vadd.f32 %v1086_v37, %v1023_v32 }
 0x2de   : > { %1136 = vst [vmem:[#allocation3 + $0x50] sm:$0xff] %v1120_v21 }
 0x2e3   : > { %v1088_v40 = vpop.f32.mrf.mxu2 }
 0x2e4   : > { %v1121_v49 = vadd.f32 %v1088_v40, %v1024_v20 }
 0x2e6   : > { %1137 = vst [vmem:[#allocation3 + $0x68] sm:$0xff] %v1121_v49 }
 0x2eb   : > { %v1091_v44 = vpop.f32.mrf.mxu2 }
 0x2ec   : > { %v1122_v62 = vadd.f32 %v1091_v44, %v1025_v52 }
 0x2ee   : > { %1138 = vst [vmem:[#allocation3 + $0x8] sm:$0xff] %v1122_v62 }
 0x2f3   : > { %v1093_v2 = vpop.f32.mrf.mxu2 }
 0x2f4   : > { %v1123_v4 = vadd.f32 %v1093_v2, %v1026_v63 }
 0x2f6   : > { %1139 = vst [vmem:[#allocation3 + $0x48] sm:$0xff] %v1123_v4 }
 0x2fb   : > { %v1096_v13 = vpop.f32.mrf.mxu2 }
 0x2fc   : > { %v1124_v15 = vadd.f32 %v1096_v13, %v1027_v6 }
 0x2fe   : > { %1140 = vst [vmem:[#allocation3 + $0x40] sm:$0xff] %v1124_v15 }
 0x303   : > { %v1098_v58 = vpop.f32.mrf.mxu2 }
 0x304   : > { %v1125_v25 = vadd.f32 %v1098_v58, %v1028_v22 }
 0x306   : > { %1141 = vst [vmem:[#allocation3 + $0x20] sm:$0xff] %v1125_v25 }
 0x30b   : > { %v1101_v45 = vpop.f32.mrf.mxu2 }
 0x30c   : > { %v1126_v46 = vadd.f32 %v1101_v45, %v1029_v38 }
 0x30e   : > { %1142 = vst [vmem:[#allocation3 + $0x10] sm:$0xff] %v1126_v46 }
 0x313   : > { %v1103_v53 = vpop.f32.mrf.mxu2 }
 0x314   : > { %v1127_v43 = vadd.f32 %v1103_v53, %v1030_v47 }
 0x316   : > { %1143 = vst [vmem:[#allocation3 + $0x38] sm:$0xff] %v1127_v43 }
 0x31b   : > { %v1106_v16 = vpop.f32.mrf.mxu2 }
 0x31c   : > { %v1128_v42 = vadd.f32 %v1106_v16, %v1031_v51 }
 0x31e   : > { %1144 = vst [vmem:[#allocation3 + $0x60] sm:$0xff] %v1128_v42 }
 0x323   : > { %v1108_v60 = vpop.f32.mrf.mxu2 }
 0x324   : > { %v1129_v17 = vadd.f32 %v1108_v60, %v1032_v28 }
 0x326   : > { %1145 = vst [vmem:[#allocation3 + $0x70] sm:$0xff] %v1129_v17 }
 0x32b   : > { %v1111_v41 = vpop.f32.mrf.mxu2 }
 0x32c   : > { %v1130_v7 = vadd.f32 %v1111_v41, %v1033_v24 }
 0x32e   : > { %1146 = vst [vmem:[#allocation3 + $0x78] sm:$0xff] %v1130_v7 }
 0x332   : > { %1151 = sbr.rel (%p1824_p1) target bundleno = 1054 (0x41e), region = 52 }
 0x333   : > { %v1113_v0 = vpop.f32.mrf.mxu2 }
 0x334   : > { %v1131_v8 = vadd.f32 %v1113_v0, %v1034_v34 }
 0x336   : > { %1147 = vst [vmem:[#allocation3 + $0x28] sm:$0xff] %v1131_v8 }
 0x337   : > { %v1198_v11 = vld [vmem:[#allocation3 + $0x78] sm:$0xff]  ;;  %v1196_v31 = vld [vmem:[#allocation3 + $0x60] sm:$0xff]  ;;  %v1197_v12 = vld [vmem:[#allocation3 + $0x70] sm:$0xff] }
 0x338   : > { %v1206_v36 = vpack.c.bf16 %v1197_v12, %v1196_v31  ;;  %v1194_v10 = vld [vmem:[#allocation3 + $0x10] sm:$0xff]  ;;  %v1195_v30 = vld [vmem:[#allocation3 + $0x38] sm:$0xff]  ;;  %v1192_v59 = vld [vmem:[#allocation3 + $0x40] sm:$0xff] }
 0x339   : > { %v1205_v54 = vpack.c.bf16 %v1195_v30, %v1194_v10  ;;  %v1193_v56 = vld [vmem:[#allocation3 + $0x20] sm:$0xff]  ;;  %v1190_v33 = vld [vmem:[#allocation3 + $0x8] sm:$0xff]  ;;  %v1188_v23 = vld [vmem:[#allocation3 + $0x50] sm:$0xff] }
 0x33a   : > { %v1204_v57 = vpack.c.bf16 %v1193_v56, %v1192_v59  ;;  %v1191_v29 = vld [vmem:[#allocation3 + $0x48] sm:$0xff]  ;;  %v1186_v19 = vld [vmem:[#allocation3 + $0x58] sm:$0xff]  ;;  %v1184_v61 = vld [vmem:[#allocation3 + $0x30] sm:$0xff] }
 0x33b   : > { %v1203_v14 = vpack.c.bf16 %v1191_v29, %v1190_v33  ;;  %v1189_v18 = vld [vmem:[#allocation3 + $0x68] sm:$0xff]  ;;  %v1187_v50 = vld [vmem:[#allocation3 + $0x18] sm:$0xff]  ;;  %v1185_v1 = vld [vmem:[#allocation3] sm:$0xff] }
 0x33c   : > { %v1202_v39 = vpack.c.bf16 %v1189_v18, %v1188_v23  ;;  %v1201_v55 = vpack.c.bf16 %v1187_v50, %v1186_v19  ;;  %v1200_v3 = vpack.c.bf16 %v1185_v1, %v1184_v61  ;;  %v1959_v5 = vld [vmem:[#allocation2] sm:$0xff]  ;;  %v1960_v32 = vld [vmem:[#allocation2 + $0x8] sm:$0xff]  ;;  %v1961_v40 = vld [vmem:[#allocation2 + $0x10] sm:$0xff] }
 0x33d   : > { %v1199_v35 = vld [vmem:[#allocation3 + $0x28] sm:$0xff]  ;;  %v1963_v9 = vld [vmem:[#allocation2 + $0x20] sm:$0xff]  ;;  %v1965_v49 = vld [vmem:[#allocation2 + $0x30] sm:$0xff] }
 0x33e   : > { %v1207_v48 = vpack.c.bf16 %v1199_v35, %v1198_v11  ;;  %v1967_v26 = vld [vmem:[#allocation2 + $0x40] sm:$0xff]  ;;  %v1964_v37 = vld [vmem:[#allocation2 + $0x28] sm:$0xff]  ;;  %v1969_v52 = vld [vmem:[#allocation2 + $0x50] sm:$0xff] }
 0x33f   : > { %v1971_v27 = vld [vmem:[#allocation2 + $0x60] sm:$0xff]  ;;  %v1968_v21 = vld [vmem:[#allocation2 + $0x48] sm:$0xff]  ;;  %v1973_v44 = vld [vmem:[#allocation2 + $0x70] sm:$0xff] }
 0x340   : > { %1304 = vmatpush.bf16.msra.mxu0 %v1207_v48  ;;  %2047 = vmatpush.bf16.msra.mxu1 %v1207_v48  ;;  %v1972_v20 = vld [vmem:[#allocation2 + $0x68] sm:$0xff]  ;;  %v1962_v62 = vld [vmem:[#allocation2 + $0x18] sm:$0xff] }
 0x341   : > { %2048 = vmatpush.bf16.msra.mxu2 %v1207_v48  ;;  %2049 = vmatpush.bf16.msra.mxu3 %v1207_v48  ;;  %v1966_v63 = vld [vmem:[#allocation2 + $0x38] sm:$0xff] }
 0x342   : > { %v1970_v2 = vld [vmem:[#allocation2 + $0x58] sm:$0xff] }
 0x343   : > { %v1974_v4 = vld [vmem:[#allocation2 + $0x78] sm:$0xff] }
 0x344   : > { %1305 = vmatpush.bf16.msra.mxu0 %v1206_v36  ;;  %2050 = vmatpush.bf16.msra.mxu1 %v1206_v36 }
 0x345   : > { %2051 = vmatpush.bf16.msra.mxu2 %v1206_v36  ;;  %2052 = vmatpush.bf16.msra.mxu3 %v1206_v36 }
 0x348   : > { %1306 = vmatpush.bf16.msra.mxu0 %v1205_v54  ;;  %2053 = vmatpush.bf16.msra.mxu1 %v1205_v54 }
 0x349   : > { %2054 = vmatpush.bf16.msra.mxu2 %v1205_v54  ;;  %2055 = vmatpush.bf16.msra.mxu3 %v1205_v54 }
 0x34c   : > { %1307 = vmatpush.bf16.msra.mxu0 %v1204_v57  ;;  %2056 = vmatpush.bf16.msra.mxu1 %v1204_v57 }
 0x34d   : > { %2057 = vmatpush.bf16.msra.mxu2 %v1204_v57  ;;  %2058 = vmatpush.bf16.msra.mxu3 %v1204_v57 }
 0x350   : > { %1308 = vmatpush.bf16.msra.mxu0 %v1203_v14  ;;  %2059 = vmatpush.bf16.msra.mxu1 %v1203_v14 }
 0x351   : > { %2060 = vmatpush.bf16.msra.mxu2 %v1203_v14  ;;  %2061 = vmatpush.bf16.msra.mxu3 %v1203_v14 }
 0x354   : > { %1309 = vmatpush.bf16.msra.mxu0 %v1202_v39  ;;  %2062 = vmatpush.bf16.msra.mxu1 %v1202_v39 }
 0x355   : > { %2063 = vmatpush.bf16.msra.mxu2 %v1202_v39  ;;  %2064 = vmatpush.bf16.msra.mxu3 %v1202_v39 }
 0x358   : > { %1310 = vmatpush.bf16.msra.mxu0 %v1201_v55  ;;  %2065 = vmatpush.bf16.msra.mxu1 %v1201_v55 }
 0x359   : > { %2066 = vmatpush.bf16.msra.mxu2 %v1201_v55  ;;  %2067 = vmatpush.bf16.msra.mxu3 %v1201_v55 }
 0x35c   : > { %1311 = vmatpush.bf16.msra.mxu0 %v1200_v3  ;;  %2068 = vmatpush.bf16.msra.mxu1 %v1200_v3 }
 0x35d   : > { %2069 = vmatpush.bf16.msra.mxu2 %v1200_v3  ;;  %2070 = vmatpush.bf16.msra.mxu3 %v1200_v3 }
 0x35f   : > { %1312 = vmatmul.bf16.vlgmr.msra.gmra.mxu0 %v1959_v5  ;;  %1332 = vmatmul.bf16.vlgmr.msra.gmra.mxu1 %v1963_v9 }
 0x360   : > { %1352 = vmatmul.bf16.vlgmr.msra.gmra.mxu2 %v1967_v26  ;;  %1372 = vmatmul.bf16.vlgmr.msra.gmra.mxu3 %v1971_v27 }
 0x36f   : > { %1317 = vmatmul.bf16.gmra.mxu0 %v1960_v32  ;;  %1337 = vmatmul.bf16.gmra.mxu1 %v1964_v37 }
 0x370   : > { %1357 = vmatmul.bf16.gmra.mxu2 %v1968_v21  ;;  %1377 = vmatmul.bf16.gmra.mxu3 %v1972_v20 }
 0x37f   : > { %1322 = vmatmul.bf16.gmra.mxu0 %v1961_v40  ;;  %1342 = vmatmul.bf16.gmra.mxu1 %v1965_v49 }
 0x380   : > { %1362 = vmatmul.bf16.gmra.mxu2 %v1969_v52  ;;  %1382 = vmatmul.bf16.gmra.mxu3 %v1973_v44 }
 0x38f   : > { %1327 = vmatmul.bf16.gmra.mxu0 %v1962_v62  ;;  %1347 = vmatmul.bf16.gmra.mxu1 %v1966_v63 }
 0x390   : > { %1367 = vmatmul.bf16.gmra.mxu2 %v1970_v2  ;;  %1387 = vmatmul.bf16.gmra.mxu3 %v1974_v4 }
 0x3dc   : > { %v1313_v6 = vpop.f32.mrf.mxu0  ;;  %v1333_v13 = vpop.f32.mrf.mxu1 }
 0x3dd   : > { %1393 = vst [vmem:[%s2624_s18] sm:$0xff] %v1313_v6 }
 0x3de   : > { %1401 = vst [vmem:[%s2624_s18 + $0x40] sm:$0xff] %v1333_v13 }
 0x3e3   : > { %v1353_v15 = vpop.f32.mrf.mxu2  ;;  %v1373_v22 = vpop.f32.mrf.mxu3 }
 0x3e4   : > { %1409 = vst [vmem:[%s2624_s18 + $0x80] sm:$0xff] %v1353_v15  ;;  %v1315_v58 = vpop.f32.mrf.mxu0  ;;  %v1335_v25 = vpop.f32.mrf.mxu1 }
 0x3e5   : > { %1417 = vst [vmem:[%s2624_s18 + $0xc0] sm:$0xff] %v1373_v22 }
 0x3e6   : > { %1394 = vst [vmem:[%s2624_s18 + $0x8] sm:$0xff] %v1315_v58 }
 0x3e7   : > { %1402 = vst [vmem:[%s2624_s18 + $0x48] sm:$0xff] %v1335_v25 }
 0x3eb   : > { %v1355_v38 = vpop.f32.mrf.mxu2  ;;  %v1375_v45 = vpop.f32.mrf.mxu3 }
 0x3ec   : > { %1410 = vst [vmem:[%s2624_s18 + $0x88] sm:$0xff] %v1355_v38  ;;  %v1318_v46 = vpop.f32.mrf.mxu0  ;;  %v1338_v47 = vpop.f32.mrf.mxu1 }
 0x3ed   : > { %1418 = vst [vmem:[%s2624_s18 + $0xc8] sm:$0xff] %v1375_v45 }
 0x3ee   : > { %1395 = vst [vmem:[%s2624_s18 + $0x10] sm:$0xff] %v1318_v46 }
 0x3ef   : > { %1403 = vst [vmem:[%s2624_s18 + $0x50] sm:$0xff] %v1338_v47 }
 0x3f3   : > { %v1358_v53 = vpop.f32.mrf.mxu2  ;;  %v1378_v43 = vpop.f32.mrf.mxu3 }
 0x3f4   : > { %1411 = vst [vmem:[%s2624_s18 + $0x90] sm:$0xff] %v1358_v53  ;;  %v1320_v51 = vpop.f32.mrf.mxu0  ;;  %v1340_v16 = vpop.f32.mrf.mxu1 }
 0x3f5   : > { %1419 = vst [vmem:[%s2624_s18 + $0xd0] sm:$0xff] %v1378_v43 }
 0x3f6   : > { %1396 = vst [vmem:[%s2624_s18 + $0x18] sm:$0xff] %v1320_v51 }
 0x3f7   : > { %1404 = vst [vmem:[%s2624_s18 + $0x58] sm:$0xff] %v1340_v16 }
 0x3fb   : > { %v1360_v42 = vpop.f32.mrf.mxu2  ;;  %v1380_v28 = vpop.f32.mrf.mxu3 }
 0x3fc   : > { %1412 = vst [vmem:[%s2624_s18 + $0x98] sm:$0xff] %v1360_v42  ;;  %v1323_v60 = vpop.f32.mrf.mxu0  ;;  %v1343_v17 = vpop.f32.mrf.mxu1 }
 0x3fd   : > { %1420 = vst [vmem:[%s2624_s18 + $0xd8] sm:$0xff] %v1380_v28 }
 0x3fe   : > { %1397 = vst [vmem:[%s2624_s18 + $0x20] sm:$0xff] %v1323_v60 }
 0x3ff   : > { %1405 = vst [vmem:[%s2624_s18 + $0x60] sm:$0xff] %v1343_v17 }
 0x403   : > { %v1363_v24 = vpop.f32.mrf.mxu2  ;;  %v1383_v41 = vpop.f32.mrf.mxu3 }
 0x404   : > { %1413 = vst [vmem:[%s2624_s18 + $0xa0] sm:$0xff] %v1363_v24  ;;  %v1325_v7 = vpop.f32.mrf.mxu0  ;;  %v1345_v34 = vpop.f32.mrf.mxu1 }
 0x405   : > { %1421 = vst [vmem:[%s2624_s18 + $0xe0] sm:$0xff] %v1383_v41 }
 0x406   : > { %1398 = vst [vmem:[%s2624_s18 + $0x28] sm:$0xff] %v1325_v7 }
 0x407   : > { %1406 = vst [vmem:[%s2624_s18 + $0x68] sm:$0xff] %v1345_v34 }
 0x40b   : > { %v1365_v0 = vpop.f32.mrf.mxu2  ;;  %v1385_v8 = vpop.f32.mrf.mxu3 }
 0x40c   : > { %1414 = vst [vmem:[%s2624_s18 + $0xa8] sm:$0xff] %v1365_v0  ;;  %v1328_v11 = vpop.f32.mrf.mxu0  ;;  %v1348_v35 = vpop.f32.mrf.mxu1 }
 0x40d   : > { %1422 = vst [vmem:[%s2624_s18 + $0xe8] sm:$0xff] %v1385_v8 }
 0x40e   : > { %1399 = vst [vmem:[%s2624_s18 + $0x30] sm:$0xff] %v1328_v11 }
 0x40f   : > { %1407 = vst [vmem:[%s2624_s18 + $0x70] sm:$0xff] %v1348_v35 }
 0x413   : > { %v1368_v31 = vpop.f32.mrf.mxu2  ;;  %v1388_v48 = vpop.f32.mrf.mxu3 }
 0x414   : > { %1415 = vst [vmem:[%s2624_s18 + $0xb0] sm:$0xff] %v1368_v31  ;;  %v1330_v12 = vpop.f32.mrf.mxu0  ;;  %v1350_v36 = vpop.f32.mrf.mxu1 }
 0x415   : > { %1423 = vst [vmem:[%s2624_s18 + $0xf0] sm:$0xff] %v1388_v48 }
 0x416   : > { %1400 = vst [vmem:[%s2624_s18 + $0x38] sm:$0xff] %v1330_v12 }
 0x417   : > { %1408 = vst [vmem:[%s2624_s18 + $0x78] sm:$0xff] %v1350_v36 }
 0x41b   : > { %v1370_v10 = vpop.f32.mrf.mxu2  ;;  %v1390_v30 = vpop.f32.mrf.mxu3 }
 0x41c   : > { %1416 = vst [vmem:[%s2624_s18 + $0xb8] sm:$0xff] %v1370_v10 }
 0x41d   : > { %1424 = vst [vmem:[%s2624_s18 + $0xf8] sm:$0xff] %v1390_v30 }
 0x41e PF: > { %s3071_s9 = sld [smem:[#allocation16_spill]]  ;;  %s1438_s2 = sshll.u32 %s2624_s18, 4  ;;  %s1439_s2 = int_to_ptr.vmem [resolvable:$true] %s1438_s2 }
 0x41f   : > { %s3073_s7 = sld [smem:[#allocation22_spill]]  ;;  %s1426_s30 = scalar_lea.sflag [#allocation6], %s236_s3 }
 0x424   : > { %s1975_s23 = sshll.u32 %s3071_s9, 8 }
 0x425   : > { %s1437_s15 = scalar_lea.hbm %s3073_s7, %s1975_s23  ;;  %s2339_s26 = scalar_lea.hbm %s3073_s7, 512 }
 0x426   : > { %s1440_s28 = sshll.u32 %s1437_s15, 4  ;;  %s1441_s28 = int_to_ptr.hbm [resolvable:$true] %s1440_s28 }
 0x427   : > { %s2333_s6 = sshra.s32 %s1441_s28, 4  ;;  %s2334_s6 = int_to_ptr.hbm [resolvable:$true] %s2333_s6 }
 0x428   : > { %s2335_s12 = scalar_lea.hbm %s2334_s6, 256  ;;  %p2340_p3 = scmp.lt.s32.totalorder %s2334_s6, %s3073_s7 }
 0x429   : > { %p2336_p4 = scmp.ne.s32.totalorder %s2334_s6, %s2335_s12  ;;  %p2341_p5 = scmp.lt.s32.totalorder %s2339_s26, %s2335_s12 }
 0x42b   : > { %p2337_p0 = pnand %p2336_p4, %p2547_p6  ;;  %p2342_p7 = por %p2341_p5, %p2340_p3 }
 0x42d   : > { %p2338_p2 = pneg %p2337_p0 }
 0x42f   : > { %p2343_p8 = pnand %p2342_p7, %p2338_p2 }
 0x431   : > { %2346 = shalt.err (!%p2343_p8)
}
 0x432   : > { %s2454_s3 = smov 128   ;;  %s2455_s18 = smov 8  }
 0x433   : > { %2109 = dma.vmem_to_hbm [thread:$0]  (%p2547_p6), %s1439_s2, 4096, %s1441_s28, %s1426_s30, %s2454_s3, %s2454_s3, %s2455_s18  }
 0x434 PF: > { %s3074_s8 = sld [smem:[#allocation14_spill]]  ;;  %p2131_p9 = scmp.ge.s32.totalorder %s2445_s22, 2 }
 0x436   : > { %p2123_p12 = pnand %p2131_p9, %p2553_p10 }
 0x438   : > { %p2124_p13 = pneg %p2123_p12 }
 0x43a   : > { %s1455_s23 = sand.u32 1, %s3074_s8  }
 0x43b   : > { %s1456_s5 = scalar_lea.sflag [#allocation6], %s1455_s23 }
 0x43c   : > { %2400 = dma.done.wait (%p2124_p13), %s1456_s5, 4096  }
 0x43d   : > { %2402 = vsyncadd (%p2124_p13), %s1456_s5, 4294963200  ;;  %s20_s22 = sadd.s32 1, %s2445_s22   ;;  %s3076_s10 = sld [smem:[#allocation19_spill]] }
 0x43e   : > { %p17_p11 = scmp.ge.s32.totalorder %s20_s22, 6   ;;  %s3077_s12 = smov %s2409_s13 }
 0x43f   : > { %s3078_s13 = smov %s2413_s14  ;;  %s3079_s14 = smov %s2595_s24 }
 0x440   : > { %s3080_s15 = smov %s2421_s16  ;;  %s3081_s16 = smov %s2425_s17 }
 0x441   : > { %s3082_s17 = smov %s2598_s1  ;;  %s3083_s18 = smov %s2437_s20 }
 0x442   : > { %s3084_s19 = smov %s2441_s21  ;;  %s3086_s21 = smov %s3092_s4 }
 0x443   : > { %s3085_s20 = smov %s3076_s10  ;;  %19 = sbr.rel (!%p17_p11) target bundleno = 14 (0xe), region = 94 }
 0x448   :  { %1462 = vsyncpa [#allocation5], 1 }
 0x449   :  { %1464 = vsyncpa [#allocation5 + $0x1], 1 }
 0x44a   :  { %1465 = vsyncpa [#allocation8], 1 }
 0x44b   :  { %1466 = vsyncpa [#allocation6], 1 }
 0x44c   :  { %1468 = vsyncpa [#allocation6 + $0x1], 1 }

</bundles_post_ra>
